<compile_context>
chip_gen: v5e
topology: v5e:2x2
jax: 0.10.0
libtpu: 0.0.40
codegen_flags: <defaults>
</compile_context>

<pallas_src>
import functools

import jax
import jax.numpy as jnp
from jax.experimental import pallas as pl
from jax.experimental.pallas import tpu as pltpu


def _num_tensorcores():
    """Best-effort TensorCores-per-chip (v7x: 2, v5e/v6e: 1)."""
    try:
        kind = jax.devices()[0].device_kind.lower()
    except Exception:
        return 1
    return 2 if ("7x" in kind or "v7" in kind) else 1


def _cab_kernel(x_ref, small_ref, band1_ref, band2_ref, band3a_ref,
                band3b_ref, spmats_ref, o_ref, *, H, W, n_img, Cf, Cm, Cr):
    R = n_img * H              # image rows in this block
    WCf = W * Cf
    WCm = W * Cm

    x = x_ref[...].astype(jnp.float32)                    # (R, W*Cf), lane-dense

    # ---- packed small constants (biases pre-tiled to lane layout, CA fc) ----
    small = small_ref[...]
    b1row = small[0:1, :WCm]
    b2row = small[1:2, :WCm]
    spbrow = small[2:3, :WCm]
    b3row = small[3:4, :WCf]
    sab = small[4:5, 0:1]
    caw1 = small[5:5 + Cm, :Cr]
    caw2 = small[5 + Cm:5 + Cm + Cr, :Cm]

    # ---- row-validity masks for the dy = -1 / +1 conv taps --------------
    # Built once from an iota, broadcast once at max width, sliced for the
    # narrower conv outputs (hoisted broadcasts).
    rr = jax.lax.broadcasted_iota(jnp.int32, (R, 1), 0) % H
    neg_ok = jnp.broadcast_to((rr >= 1).astype(jnp.float32), (R, WCf))
    pos_ok = jnp.broadcast_to((rr <= H - 2).astype(jnp.float32), (R, WCf))
    neg_s = neg_ok[:, :WCm]
    pos_s = pos_ok[:, :WCm]

    def conv3x3(streams, neg_m, pos_m):
        """Banded 3x3 conv.

        streams: list of (input (R, W*Cin) f32, band ref (3, W*Cin, W*Cout)).
        Each ky row is one MXU matmul of the (±1-row rolled) slab against a
        shifted block-diagonal weight; x-borders are baked into the band and
        y-borders are zeroed by the row masks on the output rows.
        """
        mid = up = dn = None
        for inp, band in streams:
            x0 = inp.astype(jnp.bfloat16)
            xm = pltpu.roll(inp, shift=1, axis=0).astype(jnp.bfloat16)      # row r-1
            xp = pltpu.roll(inp, shift=R - 1, axis=0).astype(jnp.bfloat16)  # row r+1
            t0 = jnp.dot(x0, band[1], preferred_element_type=jnp.float32)
            tm = jnp.dot(xm, band[0], preferred_element_type=jnp.float32)
            tp = jnp.dot(xp, band[2], preferred_element_type=jnp.float32)
            mid = t0 if mid is None else mid + t0
            up = tm if up is None else up + tm
            dn = tp if dn is None else dn + tp
        return mid + up * neg_m + dn * pos_m

    # ---- conv1 (3x3, pad 1) + SiLU, conv2 (3x3, pad 1) + SiLU ----
    h1 = jax.nn.silu(conv3x3([(x, band1_ref)], neg_s, pos_s) + b1row)
    x_conv = jax.nn.silu(conv3x3([(h1, band2_ref)], neg_s, pos_s) + b2row)

    # ---- channel attention: per-image avg/max pool, shared fc run once ----
    if n_img == 1:
        rsum = jnp.sum(x_conv, axis=0, keepdims=True)          # (1, W*Cm)
        rmax = jnp.max(x_conv, axis=0, keepdims=True)
    else:
        xc3 = x_conv.reshape(n_img, H, WCm)
        rsum = jnp.sum(xc3, axis=1)                            # (n_img, W*Cm)
        rmax = jnp.max(xc3, axis=1)
    csum = rsum[:, 0:Cm]
    cmax = rmax[:, 0:Cm]
    for w in range(1, W):                                      # fold lane groups
        csum = csum + rsum[:, w * Cm:(w + 1) * Cm]
        cmax = jnp.maximum(cmax, rmax[:, w * Cm:(w + 1) * Cm])
    pooled = jnp.concatenate([csum * (1.0 / (H * W)), cmax], axis=0)  # (2n, Cm)
    hid = jnp.maximum(
        jnp.dot(pooled, caw1, preferred_element_type=jnp.float32), 0.0)
    fc = jnp.dot(hid, caw2, preferred_element_type=jnp.float32)
    ca = jax.nn.sigmoid(fc[:n_img] + fc[n_img:])               # (n_img, Cm)
    # Scatter ca back to the lane layout (lane w*Cm + c <- ca[c]) via a tiny
    # 0/1 matmul built from iota (avoids any in-kernel minor-dim reshape).
    lane_i = jax.lax.broadcasted_iota(jnp.int32, (Cm, WCm), 1)
    chan_i = jax.lax.broadcasted_iota(jnp.int32, (Cm, WCm), 0)
    spread = (lane_i % Cm == chan_i).astype(jnp.float32)       # (Cm, W*Cm)
    ca_w = jnp.dot(ca, spread, preferred_element_type=jnp.float32)
    if n_img == 1:
        out_ch = x_conv * ca_w
    else:
        out_ch = (xc3 * ca_w[:, None, :]).reshape(R, WCm)

    # ---- spatial attention + conv_sp (1x1) as block-diagonal matmuls ----
    xc_bf = x_conv.astype(jnp.bfloat16)
    sa = jax.nn.sigmoid(
        jnp.dot(xc_bf, spmats_ref[0], preferred_element_type=jnp.float32) + sab)
    out_sp = (jnp.dot((x_conv * sa).astype(jnp.bfloat16), spmats_ref[1],
                      preferred_element_type=jnp.float32) + spbrow)

    # ---- conv3 (3x3) over the [out_ch ; out_sp] channel concat -----------
    # The concat is folded into two banded matmuls, so no lane interleave.
    out = conv3x3([(out_ch, band3a_ref), (out_sp, band3b_ref)],
                  neg_ok, pos_ok) + b3row
    o_ref[...] = (out + x).astype(o_ref.dtype)                 # full-width store


def cab_pallas(x, params, *, images_per_block=None):
    """x: (N, H, W, num_feat) NHWC; params in HWIO / (Cin, Cout) layout."""
    N, H, W, Cf = x.shape
    (w1, b1, w2, b2, caw1, caw2, saw, sab, spw, spb, w3, b3) = params
    Cm = w1.shape[-1]
    Cr = caw1.shape[-1]

    if images_per_block is None:
        # v7x: keep an even grid of 2 so the "parallel" batch axis shards
        # across both TensorCores.  Single-TC chips (v5e/v6e): one fat block
        # (fewer ~0.35us grid steps, bigger matmul M).
        if _num_tensorcores() >= 2 and N >= 2 and N % 2 == 0:
            images_per_block = N // 2
        else:
            images_per_block = N
    NB = images_per_block
    assert N % NB == 0, "batch must be divisible by images_per_block"
    assert (NB * H) % 8 == 0, "block row count must be a multiple of 8"

    WCf, WCm = W * Cf, W * Cm

    # --- banded 3x3 conv weights: one (W*Cin, W*Cout) slab per ky, with the
    #     1-pixel x-padding baked into the shifted block-diagonal structure ---
    def band(w_hwio):
        bs = []
        for ky in range(3):
            b = sum(jnp.kron(jnp.eye(W, k=-(kx - 1), dtype=jnp.float32),
                             w_hwio[ky, kx].astype(jnp.float32))
                    for kx in range(3))
            bs.append(b)
        return jnp.stack(bs, axis=0).astype(jnp.bfloat16)   # (3, W*Cin, W*Cout)

    band1 = band(w1)                    # (3, W*Cf, W*Cm)
    band2 = band(w2)                    # (3, W*Cm, W*Cm)
    band3a = band(w3[:, :, :Cm, :])     # (3, W*Cm, W*Cf)  (out_ch channels)
    band3b = band(w3[:, :, Cm:, :])     # (3, W*Cm, W*Cf)  (out_sp channels)

    # --- 1x1 SA / conv_sp as block-diagonal lane matmuls ---
    eye_w = jnp.eye(W, dtype=jnp.float32)
    samat = jnp.kron(eye_w, saw.reshape(Cm, 1) * jnp.ones((1, Cm), jnp.float32))
    spmat = jnp.kron(eye_w, spw.astype(jnp.float32))
    spmats = jnp.stack([samat, spmat], axis=0).astype(jnp.bfloat16)

    # --- pack all the small constants into one (rows, W*Cf) f32 slab ---
    def tile_bias(b, cout):
        return jnp.tile(jnp.asarray(b, jnp.float32).reshape(1, cout), (1, W))

    def rowpad(a):
        a = jnp.asarray(a, jnp.float32).reshape(-1, a.shape[-1])
        return jnp.pad(a, ((0, 0), (0, WCf - a.shape[-1])))

    small = jnp.concatenate([
        rowpad(tile_bias(b1, Cm)),           # row 0: conv1 bias (lane-tiled)
        rowpad(tile_bias(b2, Cm)),           # row 1: conv2 bias
        rowpad(tile_bias(spb, Cm)),          # row 2: conv_sp bias
        rowpad(tile_bias(b3, Cf)),           # row 3: conv3 bias
        rowpad(jnp.reshape(sab, (1, 1))),    # row 4: SA bias scalar
        rowpad(caw1),                        # rows 5..5+Cm-1:      CA fc1
        rowpad(caw2),                        # rows 5+Cm..5+Cm+Cr-1: CA fc2
    ], axis=0)

    x2 = x.reshape(N * H, WCf)               # lane-dense (image_row, W*Cf)

    kernel = functools.partial(_cab_kernel, H=H, W=W, n_img=NB,
                               Cf=Cf, Cm=Cm, Cr=Cr)

    def const2(a):
        return pl.BlockSpec(a.shape, lambda n: (0, 0))

    def const3(a):
        return pl.BlockSpec(a.shape, lambda n: (0, 0, 0))

    out = pl.pallas_call(
        kernel,
        out_shape=jax.ShapeDtypeStruct((N * H, WCf), x.dtype),
        grid_spec=pltpu.PrefetchScalarGridSpec(
            num_scalar_prefetch=0,
            grid=(N // NB,),
            in_specs=[
                pl.BlockSpec((NB * H, WCf), lambda n: (n, 0)),
                const2(small),
                const3(band1), const3(band2),
                const3(band3a), const3(band3b),
                const3(spmats),
            ],
            out_specs=pl.BlockSpec((NB * H, WCf), lambda n: (n, 0)),
        ),
        compiler_params=pltpu.CompilerParams(
            dimension_semantics=("parallel",)),
    )(x2, small, band1, band2, band3a, band3b, spmats)
    return out.reshape(N, H, W, Cf)


# ----------------------------- pure-JAX reference -----------------------------
def _conv2d_ref(x, w, b, pad):
    out = jax.lax.conv_general_dilated(
        x, w, (1, 1), ((pad, pad), (pad, pad)),
        dimension_numbers=("NHWC", "HWIO", "NHWC"))
    return out + b


def cab_ref(x, params):
    (w1, b1, w2, b2, caw1, caw2, saw, sab, spw, spb, w3, b3) = params
    silu = jax.nn.silu
    x_conv = silu(_conv2d_ref(silu(_conv2d_ref(x, w1, b1, 1)), w2, b2, 1))

    avg = jnp.mean(x_conv, axis=(1, 2), keepdims=True)
    mx = jnp.max(x_conv, axis=(1, 2), keepdims=True)

    def fc(v):
        h = jnp.maximum(jnp.einsum('nhwc,cd->nhwd', v, caw1), 0.0)
        return jnp.einsum('nhwd,dc->nhwc', h, caw2)

    ca = jax.nn.sigmoid(fc(avg) + fc(mx))
    out_ch = x_conv * ca

    sa = jax.nn.sigmoid(jnp.einsum('nhwc,co->nhwo', x_conv, saw) + sab)
    out_sp = x_conv * sa
    out_sp = jnp.einsum('nhwc,cd->nhwd', out_sp, spw) + spb

    comb = jnp.concatenate([out_ch, out_sp], axis=-1)
    return _conv2d_ref(comb, w3, b3, 1) + x


# ------------------------------------ main ------------------------------------
if __name__ == "__main__":
    # CAB(num_feat=16, compress_ratio=4, squeeze_factor=2)
    num_feat, compress_ratio, squeeze_factor = 16, 4, 2
    Cf = num_feat
    Cm = num_feat // compress_ratio          # 4
    Cr = Cm // squeeze_factor                # 2
    N, H, W = 2, 16, 16

    key = jax.random.PRNGKey(0)
    ks = jax.random.split(key, 16)
    s = 0.2
    x = jax.random.normal(ks[0], (N, H, W, Cf), jnp.float32)

    params = (
        s * jax.random.normal(ks[1], (3, 3, Cf, Cm), jnp.float32),      # conv1 w
        s * jax.random.normal(ks[2], (1, Cm), jnp.float32),             # conv1 b
        s * jax.random.normal(ks[3], (3, 3, Cm, Cm), jnp.float32),      # conv2 w
        s * jax.random.normal(ks[4], (1, Cm), jnp.float32),             # conv2 b
        s * jax.random.normal(ks[5], (Cm, Cr), jnp.float32),            # CA fc1 w (no bias)
        s * jax.random.normal(ks[6], (Cr, Cm), jnp.float32),            # CA fc2 w (no bias)
        s * jax.random.normal(ks[7], (Cm, 1), jnp.float32),             # SA 1x1 w
        s * jax.random.normal(ks[8], (1, 1), jnp.float32),              # SA 1x1 b
        s * jax.random.normal(ks[9], (Cm, Cm), jnp.float32),            # conv_sp w
        s * jax.random.normal(ks[10], (1, Cm), jnp.float32),            # conv_sp b
        s * jax.random.normal(ks[11], (3, 3, 2 * Cm, Cf), jnp.float32), # conv3 w
        s * jax.random.normal(ks[12], (1, Cf), jnp.float32),            # conv3 b
    )

    out = jax.block_until_ready(cab_pallas(x, params))
    ref = jax.block_until_ready(cab_ref(x, params))

    assert out.shape == (N, H, W, Cf)
    # Tolerance accounts for bf16 MXU operands (same regime as XLA's default
    # f32 matmul precision on TPU); elementwise math stays f32.
    err = float(jnp.max(jnp.abs(out - ref)))
    assert err < 5e-2, f"max abs err = {err}"
    print("KERNEL_OK")
</pallas_src>

<mosaic_0001>
module attributes {stable_mosaic.version = 11 : i64} {
  func.func @_cab_kernel(%arg0: i32, %arg1: memref<32x256xf32, #tpu.memory_space<vmem>>, %arg2: memref<11x256xf32, #tpu.memory_space<vmem>>, %arg3: memref<3x256x64xbf16, #tpu.memory_space<vmem>>, %arg4: memref<3x64x64xbf16, #tpu.memory_space<vmem>>, %arg5: memref<3x64x256xbf16, #tpu.memory_space<vmem>>, %arg6: memref<3x64x256xbf16, #tpu.memory_space<vmem>>, %arg7: memref<2x64x64xbf16, #tpu.memory_space<vmem>>, %arg8: memref<32x256xf32, #tpu.memory_space<vmem>>) attributes {dimension_semantics = [#tpu.dimension_semantics<parallel>], iteration_bounds = array<i64: 1>, scalar_prefetch = 0 : i64, scratch_operands = 0 : i64, tpu.core_type = #tpu.core_type<tc>, window_params = [{transform_indices = @transform_0, window_bounds = array<i64: 32, 256>}, {pipeline_mode = #tpu.pipeline_mode<synchronous>, transform_indices = @transform_1, window_bounds = array<i64: 11, 256>}, {pipeline_mode = #tpu.pipeline_mode<synchronous>, transform_indices = @transform_2, window_bounds = array<i64: 3, 256, 64>}, {pipeline_mode = #tpu.pipeline_mode<synchronous>, transform_indices = @transform_3, window_bounds = array<i64: 3, 64, 64>}, {pipeline_mode = #tpu.pipeline_mode<synchronous>, transform_indices = @transform_4, window_bounds = array<i64: 3, 64, 256>}, {pipeline_mode = #tpu.pipeline_mode<synchronous>, transform_indices = @transform_5, window_bounds = array<i64: 3, 64, 256>}, {pipeline_mode = #tpu.pipeline_mode<synchronous>, transform_indices = @transform_6, window_bounds = array<i64: 2, 64, 64>}, {transform_indices = @transform_7, window_bounds = array<i64: 32, 256>}]} {
    %c0 = arith.constant 0 : index
    %c0_0 = arith.constant 0 : index
    %0 = vector.load %arg1[%c0, %c0_0] : memref<32x256xf32, #tpu.memory_space<vmem>>, vector<32x256xf32>
    %c0_1 = arith.constant 0 : index
    %c0_2 = arith.constant 0 : index
    %1 = vector.load %arg2[%c0_1, %c0_2] : memref<11x256xf32, #tpu.memory_space<vmem>>, vector<11x256xf32>
    %2 = vector.extract_strided_slice %1 {offsets = [0, 0], sizes = [1, 64], strides = [1, 1]} : vector<11x256xf32> to vector<1x64xf32>
    %3 = vector.extract_strided_slice %1 {offsets = [1, 0], sizes = [1, 64], strides = [1, 1]} : vector<11x256xf32> to vector<1x64xf32>
    %4 = vector.extract_strided_slice %1 {offsets = [2, 0], sizes = [1, 64], strides = [1, 1]} : vector<11x256xf32> to vector<1x64xf32>
    %5 = vector.extract_strided_slice %1 {offsets = [3, 0], sizes = [1, 256], strides = [1, 1]} : vector<11x256xf32> to vector<1x256xf32>
    %6 = vector.extract_strided_slice %1 {offsets = [4, 0], sizes = [1, 1], strides = [1, 1]} : vector<11x256xf32> to vector<1x1xf32>
    %7 = vector.extract_strided_slice %1 {offsets = [5, 0], sizes = [4, 2], strides = [1, 1]} : vector<11x256xf32> to vector<4x2xf32>
    %8 = vector.extract_strided_slice %1 {offsets = [9, 0], sizes = [2, 4], strides = [1, 1]} : vector<11x256xf32> to vector<2x4xf32>
    %9 = tpu.iota {dimensions = array<i32: 0>} : vector<32x1xi32>
    %c16_i32 = arith.constant 16 : i32
    %c0_i32 = arith.constant 0 : i32
    %10 = arith.cmpi eq, %c16_i32, %c0_i32 : i32
    %c1_i32 = arith.constant 1 : i32
    %11 = arith.select %10, %c1_i32, %c16_i32 : i32
    %12 = vector.broadcast %11 : i32 to vector<32x1xi32>
    %13 = arith.remsi %9, %12 : vector<32x1xi32>
    %c0_i32_3 = arith.constant 0 : i32
    %14 = vector.broadcast %c0_i32_3 : i32 to vector<32x1xi32>
    %15 = arith.cmpi ne, %13, %14 : vector<32x1xi32>
    %c0_i32_4 = arith.constant 0 : i32
    %16 = vector.broadcast %c0_i32_4 : i32 to vector<32x1xi32>
    %17 = arith.cmpi slt, %13, %16 : vector<32x1xi32>
    %c0_i32_5 = arith.constant 0 : i32
    %18 = arith.cmpi slt, %11, %c0_i32_5 : i32
    %19 = vector.broadcast %18 : i1 to vector<32x1xi1>
    %20 = vector.broadcast %19 : vector<32x1xi1> to vector<32x1xi1>
    %21 = arith.xori %17, %20 : vector<32x1xi1>
    %22 = arith.andi %21, %15 : vector<32x1xi1>
    %23 = vector.broadcast %11 : i32 to vector<32x1xi32>
    %24 = arith.addi %13, %23 : vector<32x1xi32>
    %25 = arith.select %22, %24, %13 : vector<32x1xi1>, vector<32x1xi32>
    %c1_i32_6 = arith.constant 1 : i32
    %26 = vector.broadcast %c1_i32_6 : i32 to vector<32x1xi32>
    %27 = arith.cmpi sge, %25, %26 : vector<32x1xi32>
    %28 = arith.extui %27 : vector<32x1xi1> to vector<32x1xi32>
    %29 = arith.sitofp %28 : vector<32x1xi32> to vector<32x1xf32>
    %30 = vector.shape_cast %29 : vector<32x1xf32> to vector<32x1xf32>
    %31 = vector.broadcast %30 : vector<32x1xf32> to vector<32x256xf32>
    %c14_i32 = arith.constant 14 : i32
    %32 = vector.broadcast %c14_i32 : i32 to vector<32x1xi32>
    %33 = arith.cmpi sle, %25, %32 : vector<32x1xi32>
    %34 = arith.extui %33 : vector<32x1xi1> to vector<32x1xi32>
    %35 = arith.sitofp %34 : vector<32x1xi32> to vector<32x1xf32>
    %36 = vector.shape_cast %35 : vector<32x1xf32> to vector<32x1xf32>
    %37 = vector.broadcast %36 : vector<32x1xf32> to vector<32x256xf32>
    %38 = vector.extract_strided_slice %31 {offsets = [0, 0], sizes = [32, 64], strides = [1, 1]} : vector<32x256xf32> to vector<32x64xf32>
    %39 = vector.extract_strided_slice %37 {offsets = [0, 0], sizes = [32, 64], strides = [1, 1]} : vector<32x256xf32> to vector<32x64xf32>
    %40 = arith.truncf %0 : vector<32x256xf32> to vector<32x256xbf16>
    %c1_i32_7 = arith.constant 1 : i32
    %41 = tpu.dynamic_rotate %0 by %c1_i32_7 dim 0 : vector<32x256xf32>, i32 -> vector<32x256xf32>
    %42 = arith.truncf %41 : vector<32x256xf32> to vector<32x256xbf16>
    %c31_i32 = arith.constant 31 : i32
    %43 = tpu.dynamic_rotate %0 by %c31_i32 dim 0 : vector<32x256xf32>, i32 -> vector<32x256xf32>
    %44 = arith.truncf %43 : vector<32x256xf32> to vector<32x256xbf16>
    %c1 = arith.constant 1 : index
    %c0_8 = arith.constant 0 : index
    %c0_9 = arith.constant 0 : index
    %45 = vector.load %arg3[%c1, %c0_8, %c0_9] : memref<3x256x64xbf16, #tpu.memory_space<vmem>>, vector<1x256x64xbf16>
    %46 = vector.shape_cast %45 : vector<1x256x64xbf16> to vector<256x64xbf16>
    %cst = arith.constant dense<0.000000e+00> : vector<32x64xf32>
    %47 = tpu.matmul %40, %46, %cst {dimension_numbers = #tpu.dot_dimension_numbers<[1], [0], [0], [1], [0, 0, 1, 1], [], []>} : vector<32x256xbf16>, vector<256x64xbf16>, vector<32x64xf32> -> vector<32x64xf32>
    %c0_10 = arith.constant 0 : index
    %c0_11 = arith.constant 0 : index
    %c0_12 = arith.constant 0 : index
    %48 = vector.load %arg3[%c0_10, %c0_11, %c0_12] : memref<3x256x64xbf16, #tpu.memory_space<vmem>>, vector<1x256x64xbf16>
    %49 = vector.shape_cast %48 : vector<1x256x64xbf16> to vector<256x64xbf16>
    %cst_13 = arith.constant dense<0.000000e+00> : vector<32x64xf32>
    %50 = tpu.matmul %42, %49, %cst_13 {dimension_numbers = #tpu.dot_dimension_numbers<[1], [0], [0], [1], [0, 0, 1, 1], [], []>} : vector<32x256xbf16>, vector<256x64xbf16>, vector<32x64xf32> -> vector<32x64xf32>
    %c2 = arith.constant 2 : index
    %c0_14 = arith.constant 0 : index
    %c0_15 = arith.constant 0 : index
    %51 = vector.load %arg3[%c2, %c0_14, %c0_15] : memref<3x256x64xbf16, #tpu.memory_space<vmem>>, vector<1x256x64xbf16>
    %52 = vector.shape_cast %51 : vector<1x256x64xbf16> to vector<256x64xbf16>
    %cst_16 = arith.constant dense<0.000000e+00> : vector<32x64xf32>
    %53 = tpu.matmul %44, %52, %cst_16 {dimension_numbers = #tpu.dot_dimension_numbers<[1], [0], [0], [1], [0, 0, 1, 1], [], []>} : vector<32x256xbf16>, vector<256x64xbf16>, vector<32x64xf32> -> vector<32x64xf32>
    %54 = arith.mulf %50, %38 : vector<32x64xf32>
    %55 = arith.addf %47, %54 : vector<32x64xf32>
    %56 = arith.mulf %53, %39 : vector<32x64xf32>
    %57 = arith.addf %55, %56 : vector<32x64xf32>
    %58 = vector.broadcast %2 : vector<1x64xf32> to vector<32x64xf32>
    %59 = arith.addf %57, %58 : vector<32x64xf32>
    %60 = arith.negf %59 : vector<32x64xf32>
    %61 = math.exp %60 : vector<32x64xf32>
    %cst_17 = arith.constant 1.000000e+00 : f32
    %62 = vector.broadcast %cst_17 : f32 to vector<32x64xf32>
    %63 = arith.addf %62, %61 : vector<32x64xf32>
    %64 = arith.divf %62, %63 : vector<32x64xf32>
    %65 = arith.mulf %59, %64 : vector<32x64xf32>
    %66 = arith.truncf %65 : vector<32x64xf32> to vector<32x64xbf16>
    %c1_i32_18 = arith.constant 1 : i32
    %67 = tpu.dynamic_rotate %65 by %c1_i32_18 dim 0 : vector<32x64xf32>, i32 -> vector<32x64xf32>
    %68 = arith.truncf %67 : vector<32x64xf32> to vector<32x64xbf16>
    %c31_i32_19 = arith.constant 31 : i32
    %69 = tpu.dynamic_rotate %65 by %c31_i32_19 dim 0 : vector<32x64xf32>, i32 -> vector<32x64xf32>
    %70 = arith.truncf %69 : vector<32x64xf32> to vector<32x64xbf16>
    %c1_20 = arith.constant 1 : index
    %c0_21 = arith.constant 0 : index
    %c0_22 = arith.constant 0 : index
    %71 = vector.load %arg4[%c1_20, %c0_21, %c0_22] : memref<3x64x64xbf16, #tpu.memory_space<vmem>>, vector<1x64x64xbf16>
    %72 = vector.shape_cast %71 : vector<1x64x64xbf16> to vector<64x64xbf16>
    %cst_23 = arith.constant dense<0.000000e+00> : vector<32x64xf32>
    %73 = tpu.matmul %66, %72, %cst_23 {dimension_numbers = #tpu.dot_dimension_numbers<[1], [0], [0], [1], [0, 0, 1, 1], [], []>} : vector<32x64xbf16>, vector<64x64xbf16>, vector<32x64xf32> -> vector<32x64xf32>
    %c0_24 = arith.constant 0 : index
    %c0_25 = arith.constant 0 : index
    %c0_26 = arith.constant 0 : index
    %74 = vector.load %arg4[%c0_24, %c0_25, %c0_26] : memref<3x64x64xbf16, #tpu.memory_space<vmem>>, vector<1x64x64xbf16>
    %75 = vector.shape_cast %74 : vector<1x64x64xbf16> to vector<64x64xbf16>
    %cst_27 = arith.constant dense<0.000000e+00> : vector<32x64xf32>
    %76 = tpu.matmul %68, %75, %cst_27 {dimension_numbers = #tpu.dot_dimension_numbers<[1], [0], [0], [1], [0, 0, 1, 1], [], []>} : vector<32x64xbf16>, vector<64x64xbf16>, vector<32x64xf32> -> vector<32x64xf32>
    %c2_28 = arith.constant 2 : index
    %c0_29 = arith.constant 0 : index
    %c0_30 = arith.constant 0 : index
    %77 = vector.load %arg4[%c2_28, %c0_29, %c0_30] : memref<3x64x64xbf16, #tpu.memory_space<vmem>>, vector<1x64x64xbf16>
    %78 = vector.shape_cast %77 : vector<1x64x64xbf16> to vector<64x64xbf16>
    %cst_31 = arith.constant dense<0.000000e+00> : vector<32x64xf32>
    %79 = tpu.matmul %70, %78, %cst_31 {dimension_numbers = #tpu.dot_dimension_numbers<[1], [0], [0], [1], [0, 0, 1, 1], [], []>} : vector<32x64xbf16>, vector<64x64xbf16>, vector<32x64xf32> -> vector<32x64xf32>
    %80 = arith.mulf %76, %38 : vector<32x64xf32>
    %81 = arith.addf %73, %80 : vector<32x64xf32>
    %82 = arith.mulf %79, %39 : vector<32x64xf32>
    %83 = arith.addf %81, %82 : vector<32x64xf32>
    %84 = vector.broadcast %3 : vector<1x64xf32> to vector<32x64xf32>
    %85 = arith.addf %83, %84 : vector<32x64xf32>
    %86 = arith.negf %85 : vector<32x64xf32>
    %87 = math.exp %86 : vector<32x64xf32>
    %cst_32 = arith.constant 1.000000e+00 : f32
    %88 = vector.broadcast %cst_32 : f32 to vector<32x64xf32>
    %89 = arith.addf %88, %87 : vector<32x64xf32>
    %90 = arith.divf %88, %89 : vector<32x64xf32>
    %91 = arith.mulf %85, %90 : vector<32x64xf32>
    %92 = vector.shape_cast %91 : vector<32x64xf32> to vector<2x16x64xf32>
    %cst_33 = arith.constant dense<0.000000e+00> : vector<2x64xf32>
    %93 = vector.multi_reduction <add>, %92, %cst_33 [1] : vector<2x16x64xf32> to vector<2x64xf32>
    %cst_34 = arith.constant dense<0xFF800000> : vector<2x64xf32>
    %94 = vector.multi_reduction <maximumf>, %92, %cst_34 [1] : vector<2x16x64xf32> to vector<2x64xf32>
    %95 = vector.extract_strided_slice %93 {offsets = [0, 0], sizes = [2, 4], strides = [1, 1]} : vector<2x64xf32> to vector<2x4xf32>
    %96 = vector.extract_strided_slice %94 {offsets = [0, 0], sizes = [2, 4], strides = [1, 1]} : vector<2x64xf32> to vector<2x4xf32>
    %97 = vector.extract_strided_slice %93 {offsets = [0, 4], sizes = [2, 4], strides = [1, 1]} : vector<2x64xf32> to vector<2x4xf32>
    %98 = arith.addf %95, %97 : vector<2x4xf32>
    %99 = vector.extract_strided_slice %94 {offsets = [0, 4], sizes = [2, 4], strides = [1, 1]} : vector<2x64xf32> to vector<2x4xf32>
    %100 = arith.maximumf %96, %99 : vector<2x4xf32>
    %101 = vector.extract_strided_slice %93 {offsets = [0, 8], sizes = [2, 4], strides = [1, 1]} : vector<2x64xf32> to vector<2x4xf32>
    %102 = arith.addf %98, %101 : vector<2x4xf32>
    %103 = vector.extract_strided_slice %94 {offsets = [0, 8], sizes = [2, 4], strides = [1, 1]} : vector<2x64xf32> to vector<2x4xf32>
    %104 = arith.maximumf %100, %103 : vector<2x4xf32>
    %105 = vector.extract_strided_slice %93 {offsets = [0, 12], sizes = [2, 4], strides = [1, 1]} : vector<2x64xf32> to vector<2x4xf32>
    %106 = arith.addf %102, %105 : vector<2x4xf32>
    %107 = vector.extract_strided_slice %94 {offsets = [0, 12], sizes = [2, 4], strides = [1, 1]} : vector<2x64xf32> to vector<2x4xf32>
    %108 = arith.maximumf %104, %107 : vector<2x4xf32>
    %109 = vector.extract_strided_slice %93 {offsets = [0, 16], sizes = [2, 4], strides = [1, 1]} : vector<2x64xf32> to vector<2x4xf32>
    %110 = arith.addf %106, %109 : vector<2x4xf32>
    %111 = vector.extract_strided_slice %94 {offsets = [0, 16], sizes = [2, 4], strides = [1, 1]} : vector<2x64xf32> to vector<2x4xf32>
    %112 = arith.maximumf %108, %111 : vector<2x4xf32>
    %113 = vector.extract_strided_slice %93 {offsets = [0, 20], sizes = [2, 4], strides = [1, 1]} : vector<2x64xf32> to vector<2x4xf32>
    %114 = arith.addf %110, %113 : vector<2x4xf32>
    %115 = vector.extract_strided_slice %94 {offsets = [0, 20], sizes = [2, 4], strides = [1, 1]} : vector<2x64xf32> to vector<2x4xf32>
    %116 = arith.maximumf %112, %115 : vector<2x4xf32>
    %117 = vector.extract_strided_slice %93 {offsets = [0, 24], sizes = [2, 4], strides = [1, 1]} : vector<2x64xf32> to vector<2x4xf32>
    %118 = arith.addf %114, %117 : vector<2x4xf32>
    %119 = vector.extract_strided_slice %94 {offsets = [0, 24], sizes = [2, 4], strides = [1, 1]} : vector<2x64xf32> to vector<2x4xf32>
    %120 = arith.maximumf %116, %119 : vector<2x4xf32>
    %121 = vector.extract_strided_slice %93 {offsets = [0, 28], sizes = [2, 4], strides = [1, 1]} : vector<2x64xf32> to vector<2x4xf32>
    %122 = arith.addf %118, %121 : vector<2x4xf32>
    %123 = vector.extract_strided_slice %94 {offsets = [0, 28], sizes = [2, 4], strides = [1, 1]} : vector<2x64xf32> to vector<2x4xf32>
    %124 = arith.maximumf %120, %123 : vector<2x4xf32>
    %125 = vector.extract_strided_slice %93 {offsets = [0, 32], sizes = [2, 4], strides = [1, 1]} : vector<2x64xf32> to vector<2x4xf32>
    %126 = arith.addf %122, %125 : vector<2x4xf32>
    %127 = vector.extract_strided_slice %94 {offsets = [0, 32], sizes = [2, 4], strides = [1, 1]} : vector<2x64xf32> to vector<2x4xf32>
    %128 = arith.maximumf %124, %127 : vector<2x4xf32>
    %129 = vector.extract_strided_slice %93 {offsets = [0, 36], sizes = [2, 4], strides = [1, 1]} : vector<2x64xf32> to vector<2x4xf32>
    %130 = arith.addf %126, %129 : vector<2x4xf32>
    %131 = vector.extract_strided_slice %94 {offsets = [0, 36], sizes = [2, 4], strides = [1, 1]} : vector<2x64xf32> to vector<2x4xf32>
    %132 = arith.maximumf %128, %131 : vector<2x4xf32>
    %133 = vector.extract_strided_slice %93 {offsets = [0, 40], sizes = [2, 4], strides = [1, 1]} : vector<2x64xf32> to vector<2x4xf32>
    %134 = arith.addf %130, %133 : vector<2x4xf32>
    %135 = vector.extract_strided_slice %94 {offsets = [0, 40], sizes = [2, 4], strides = [1, 1]} : vector<2x64xf32> to vector<2x4xf32>
    %136 = arith.maximumf %132, %135 : vector<2x4xf32>
    %137 = vector.extract_strided_slice %93 {offsets = [0, 44], sizes = [2, 4], strides = [1, 1]} : vector<2x64xf32> to vector<2x4xf32>
    %138 = arith.addf %134, %137 : vector<2x4xf32>
    %139 = vector.extract_strided_slice %94 {offsets = [0, 44], sizes = [2, 4], strides = [1, 1]} : vector<2x64xf32> to vector<2x4xf32>
    %140 = arith.maximumf %136, %139 : vector<2x4xf32>
    %141 = vector.extract_strided_slice %93 {offsets = [0, 48], sizes = [2, 4], strides = [1, 1]} : vector<2x64xf32> to vector<2x4xf32>
    %142 = arith.addf %138, %141 : vector<2x4xf32>
    %143 = vector.extract_strided_slice %94 {offsets = [0, 48], sizes = [2, 4], strides = [1, 1]} : vector<2x64xf32> to vector<2x4xf32>
    %144 = arith.maximumf %140, %143 : vector<2x4xf32>
    %145 = vector.extract_strided_slice %93 {offsets = [0, 52], sizes = [2, 4], strides = [1, 1]} : vector<2x64xf32> to vector<2x4xf32>
    %146 = arith.addf %142, %145 : vector<2x4xf32>
    %147 = vector.extract_strided_slice %94 {offsets = [0, 52], sizes = [2, 4], strides = [1, 1]} : vector<2x64xf32> to vector<2x4xf32>
    %148 = arith.maximumf %144, %147 : vector<2x4xf32>
    %149 = vector.extract_strided_slice %93 {offsets = [0, 56], sizes = [2, 4], strides = [1, 1]} : vector<2x64xf32> to vector<2x4xf32>
    %150 = arith.addf %146, %149 : vector<2x4xf32>
    %151 = vector.extract_strided_slice %94 {offsets = [0, 56], sizes = [2, 4], strides = [1, 1]} : vector<2x64xf32> to vector<2x4xf32>
    %152 = arith.maximumf %148, %151 : vector<2x4xf32>
    %153 = vector.extract_strided_slice %93 {offsets = [0, 60], sizes = [2, 4], strides = [1, 1]} : vector<2x64xf32> to vector<2x4xf32>
    %154 = arith.addf %150, %153 : vector<2x4xf32>
    %155 = vector.extract_strided_slice %94 {offsets = [0, 60], sizes = [2, 4], strides = [1, 1]} : vector<2x64xf32> to vector<2x4xf32>
    %156 = arith.maximumf %152, %155 : vector<2x4xf32>
    %cst_35 = arith.constant 3.906250e-03 : f32
    %157 = vector.broadcast %cst_35 : f32 to vector<2x4xf32>
    %158 = arith.mulf %154, %157 : vector<2x4xf32>
    %159 = tpu.concatenate %158, %156 in 0 : vector<2x4xf32>, vector<2x4xf32> -> vector<4x4xf32>
    %cst_36 = arith.constant dense<0.000000e+00> : vector<4x2xf32>
    %160 = tpu.matmul %159, %7, %cst_36 {dimension_numbers = #tpu.dot_dimension_numbers<[1], [0], [0], [1], [0, 0, 1, 1], [], []>} : vector<4x4xf32>, vector<4x2xf32>, vector<4x2xf32> -> vector<4x2xf32>
    %cst_37 = arith.constant 0.000000e+00 : f32
    %161 = vector.broadcast %cst_37 : f32 to vector<4x2xf32>
    %162 = arith.maximumf %160, %161 : vector<4x2xf32>
    %cst_38 = arith.constant dense<0.000000e+00> : vector<4x4xf32>
    %163 = tpu.matmul %162, %8, %cst_38 {dimension_numbers = #tpu.dot_dimension_numbers<[1], [0], [0], [1], [0, 0, 1, 1], [], []>} : vector<4x2xf32>, vector<2x4xf32>, vector<4x4xf32> -> vector<4x4xf32>
    %164 = vector.extract_strided_slice %163 {offsets = [0, 0], sizes = [2, 4], strides = [1, 1]} : vector<4x4xf32> to vector<2x4xf32>
    %165 = vector.extract_strided_slice %163 {offsets = [2, 0], sizes = [2, 4], strides = [1, 1]} : vector<4x4xf32> to vector<2x4xf32>
    %166 = arith.addf %164, %165 : vector<2x4xf32>
    %167 = arith.negf %166 : vector<2x4xf32>
    %168 = math.exp %167 : vector<2x4xf32>
    %cst_39 = arith.constant 1.000000e+00 : f32
    %169 = vector.broadcast %cst_39 : f32 to vector<2x4xf32>
    %170 = arith.addf %169, %168 : vector<2x4xf32>
    %171 = arith.divf %169, %170 : vector<2x4xf32>
    %172 = tpu.iota {dimensions = array<i32: 1>} : vector<4x64xi32>
    %173 = tpu.iota {dimensions = array<i32: 0>} : vector<4x64xi32>
    %c4_i32 = arith.constant 4 : i32
    %c0_i32_40 = arith.constant 0 : i32
    %174 = arith.cmpi eq, %c4_i32, %c0_i32_40 : i32
    %c1_i32_41 = arith.constant 1 : i32
    %175 = arith.select %174, %c1_i32_41, %c4_i32 : i32
    %176 = vector.broadcast %175 : i32 to vector<4x64xi32>
    %177 = arith.remsi %172, %176 : vector<4x64xi32>
    %c0_i32_42 = arith.constant 0 : i32
    %178 = vector.broadcast %c0_i32_42 : i32 to vector<4x64xi32>
    %179 = arith.cmpi ne, %177, %178 : vector<4x64xi32>
    %c0_i32_43 = arith.constant 0 : i32
    %180 = vector.broadcast %c0_i32_43 : i32 to vector<4x64xi32>
    %181 = arith.cmpi slt, %177, %180 : vector<4x64xi32>
    %c0_i32_44 = arith.constant 0 : i32
    %182 = arith.cmpi slt, %175, %c0_i32_44 : i32
    %183 = vector.broadcast %182 : i1 to vector<4x64xi1>
    %184 = vector.broadcast %183 : vector<4x64xi1> to vector<4x64xi1>
    %185 = arith.xori %181, %184 : vector<4x64xi1>
    %186 = arith.andi %185, %179 : vector<4x64xi1>
    %187 = vector.broadcast %175 : i32 to vector<4x64xi32>
    %188 = arith.addi %177, %187 : vector<4x64xi32>
    %189 = arith.select %186, %188, %177 : vector<4x64xi1>, vector<4x64xi32>
    %190 = arith.cmpi eq, %189, %173 : vector<4x64xi32>
    %191 = arith.extui %190 : vector<4x64xi1> to vector<4x64xi32>
    %192 = arith.sitofp %191 : vector<4x64xi32> to vector<4x64xf32>
    %cst_45 = arith.constant dense<0.000000e+00> : vector<2x64xf32>
    %193 = tpu.matmul %171, %192, %cst_45 {dimension_numbers = #tpu.dot_dimension_numbers<[1], [0], [0], [1], [0, 0, 1, 1], [], []>} : vector<2x4xf32>, vector<4x64xf32>, vector<2x64xf32> -> vector<2x64xf32>
    %194 = vector.shape_cast %193 : vector<2x64xf32> to vector<2x1x64xf32>
    %195 = vector.broadcast %194 : vector<2x1x64xf32> to vector<2x16x64xf32>
    %196 = arith.mulf %92, %195 : vector<2x16x64xf32>
    %197 = vector.shape_cast %196 : vector<2x16x64xf32> to vector<32x64xf32>
    %198 = arith.truncf %91 : vector<32x64xf32> to vector<32x64xbf16>
    %c0_46 = arith.constant 0 : index
    %c0_47 = arith.constant 0 : index
    %c0_48 = arith.constant 0 : index
    %199 = vector.load %arg7[%c0_46, %c0_47, %c0_48] : memref<2x64x64xbf16, #tpu.memory_space<vmem>>, vector<1x64x64xbf16>
    %200 = vector.shape_cast %199 : vector<1x64x64xbf16> to vector<64x64xbf16>
    %cst_49 = arith.constant dense<0.000000e+00> : vector<32x64xf32>
    %201 = tpu.matmul %198, %200, %cst_49 {dimension_numbers = #tpu.dot_dimension_numbers<[1], [0], [0], [1], [0, 0, 1, 1], [], []>} : vector<32x64xbf16>, vector<64x64xbf16>, vector<32x64xf32> -> vector<32x64xf32>
    %202 = vector.broadcast %6 : vector<1x1xf32> to vector<32x64xf32>
    %203 = arith.addf %201, %202 : vector<32x64xf32>
    %204 = arith.negf %203 : vector<32x64xf32>
    %205 = math.exp %204 : vector<32x64xf32>
    %cst_50 = arith.constant 1.000000e+00 : f32
    %206 = vector.broadcast %cst_50 : f32 to vector<32x64xf32>
    %207 = arith.addf %206, %205 : vector<32x64xf32>
    %208 = arith.divf %206, %207 : vector<32x64xf32>
    %209 = arith.mulf %91, %208 : vector<32x64xf32>
    %210 = arith.truncf %209 : vector<32x64xf32> to vector<32x64xbf16>
    %c1_51 = arith.constant 1 : index
    %c0_52 = arith.constant 0 : index
    %c0_53 = arith.constant 0 : index
    %211 = vector.load %arg7[%c1_51, %c0_52, %c0_53] : memref<2x64x64xbf16, #tpu.memory_space<vmem>>, vector<1x64x64xbf16>
    %212 = vector.shape_cast %211 : vector<1x64x64xbf16> to vector<64x64xbf16>
    %cst_54 = arith.constant dense<0.000000e+00> : vector<32x64xf32>
    %213 = tpu.matmul %210, %212, %cst_54 {dimension_numbers = #tpu.dot_dimension_numbers<[1], [0], [0], [1], [0, 0, 1, 1], [], []>} : vector<32x64xbf16>, vector<64x64xbf16>, vector<32x64xf32> -> vector<32x64xf32>
    %214 = vector.broadcast %4 : vector<1x64xf32> to vector<32x64xf32>
    %215 = arith.addf %213, %214 : vector<32x64xf32>
    %216 = arith.truncf %197 : vector<32x64xf32> to vector<32x64xbf16>
    %c1_i32_55 = arith.constant 1 : i32
    %217 = tpu.dynamic_rotate %197 by %c1_i32_55 dim 0 : vector<32x64xf32>, i32 -> vector<32x64xf32>
    %218 = arith.truncf %217 : vector<32x64xf32> to vector<32x64xbf16>
    %c31_i32_56 = arith.constant 31 : i32
    %219 = tpu.dynamic_rotate %197 by %c31_i32_56 dim 0 : vector<32x64xf32>, i32 -> vector<32x64xf32>
    %220 = arith.truncf %219 : vector<32x64xf32> to vector<32x64xbf16>
    %c1_57 = arith.constant 1 : index
    %c0_58 = arith.constant 0 : index
    %c0_59 = arith.constant 0 : index
    %221 = vector.load %arg5[%c1_57, %c0_58, %c0_59] : memref<3x64x256xbf16, #tpu.memory_space<vmem>>, vector<1x64x256xbf16>
    %222 = vector.shape_cast %221 : vector<1x64x256xbf16> to vector<64x256xbf16>
    %cst_60 = arith.constant dense<0.000000e+00> : vector<32x256xf32>
    %223 = tpu.matmul %216, %222, %cst_60 {dimension_numbers = #tpu.dot_dimension_numbers<[1], [0], [0], [1], [0, 0, 1, 1], [], []>} : vector<32x64xbf16>, vector<64x256xbf16>, vector<32x256xf32> -> vector<32x256xf32>
    %c0_61 = arith.constant 0 : index
    %c0_62 = arith.constant 0 : index
    %c0_63 = arith.constant 0 : index
    %224 = vector.load %arg5[%c0_61, %c0_62, %c0_63] : memref<3x64x256xbf16, #tpu.memory_space<vmem>>, vector<1x64x256xbf16>
    %225 = vector.shape_cast %224 : vector<1x64x256xbf16> to vector<64x256xbf16>
    %cst_64 = arith.constant dense<0.000000e+00> : vector<32x256xf32>
    %226 = tpu.matmul %218, %225, %cst_64 {dimension_numbers = #tpu.dot_dimension_numbers<[1], [0], [0], [1], [0, 0, 1, 1], [], []>} : vector<32x64xbf16>, vector<64x256xbf16>, vector<32x256xf32> -> vector<32x256xf32>
    %c2_65 = arith.constant 2 : index
    %c0_66 = arith.constant 0 : index
    %c0_67 = arith.constant 0 : index
    %227 = vector.load %arg5[%c2_65, %c0_66, %c0_67] : memref<3x64x256xbf16, #tpu.memory_space<vmem>>, vector<1x64x256xbf16>
    %228 = vector.shape_cast %227 : vector<1x64x256xbf16> to vector<64x256xbf16>
    %cst_68 = arith.constant dense<0.000000e+00> : vector<32x256xf32>
    %229 = tpu.matmul %220, %228, %cst_68 {dimension_numbers = #tpu.dot_dimension_numbers<[1], [0], [0], [1], [0, 0, 1, 1], [], []>} : vector<32x64xbf16>, vector<64x256xbf16>, vector<32x256xf32> -> vector<32x256xf32>
    %230 = arith.truncf %215 : vector<32x64xf32> to vector<32x64xbf16>
    %c1_i32_69 = arith.constant 1 : i32
    %231 = tpu.dynamic_rotate %215 by %c1_i32_69 dim 0 : vector<32x64xf32>, i32 -> vector<32x64xf32>
    %232 = arith.truncf %231 : vector<32x64xf32> to vector<32x64xbf16>
    %c31_i32_70 = arith.constant 31 : i32
    %233 = tpu.dynamic_rotate %215 by %c31_i32_70 dim 0 : vector<32x64xf32>, i32 -> vector<32x64xf32>
    %234 = arith.truncf %233 : vector<32x64xf32> to vector<32x64xbf16>
    %c1_71 = arith.constant 1 : index
    %c0_72 = arith.constant 0 : index
    %c0_73 = arith.constant 0 : index
    %235 = vector.load %arg6[%c1_71, %c0_72, %c0_73] : memref<3x64x256xbf16, #tpu.memory_space<vmem>>, vector<1x64x256xbf16>
    %236 = vector.shape_cast %235 : vector<1x64x256xbf16> to vector<64x256xbf16>
    %cst_74 = arith.constant dense<0.000000e+00> : vector<32x256xf32>
    %237 = tpu.matmul %230, %236, %cst_74 {dimension_numbers = #tpu.dot_dimension_numbers<[1], [0], [0], [1], [0, 0, 1, 1], [], []>} : vector<32x64xbf16>, vector<64x256xbf16>, vector<32x256xf32> -> vector<32x256xf32>
    %c0_75 = arith.constant 0 : index
    %c0_76 = arith.constant 0 : index
    %c0_77 = arith.constant 0 : index
    %238 = vector.load %arg6[%c0_75, %c0_76, %c0_77] : memref<3x64x256xbf16, #tpu.memory_space<vmem>>, vector<1x64x256xbf16>
    %239 = vector.shape_cast %238 : vector<1x64x256xbf16> to vector<64x256xbf16>
    %cst_78 = arith.constant dense<0.000000e+00> : vector<32x256xf32>
    %240 = tpu.matmul %232, %239, %cst_78 {dimension_numbers = #tpu.dot_dimension_numbers<[1], [0], [0], [1], [0, 0, 1, 1], [], []>} : vector<32x64xbf16>, vector<64x256xbf16>, vector<32x256xf32> -> vector<32x256xf32>
    %c2_79 = arith.constant 2 : index
    %c0_80 = arith.constant 0 : index
    %c0_81 = arith.constant 0 : index
    %241 = vector.load %arg6[%c2_79, %c0_80, %c0_81] : memref<3x64x256xbf16, #tpu.memory_space<vmem>>, vector<1x64x256xbf16>
    %242 = vector.shape_cast %241 : vector<1x64x256xbf16> to vector<64x256xbf16>
    %cst_82 = arith.constant dense<0.000000e+00> : vector<32x256xf32>
    %243 = tpu.matmul %234, %242, %cst_82 {dimension_numbers = #tpu.dot_dimension_numbers<[1], [0], [0], [1], [0, 0, 1, 1], [], []>} : vector<32x64xbf16>, vector<64x256xbf16>, vector<32x256xf32> -> vector<32x256xf32>
    %244 = arith.addf %223, %237 : vector<32x256xf32>
    %245 = arith.addf %226, %240 : vector<32x256xf32>
    %246 = arith.addf %229, %243 : vector<32x256xf32>
    %247 = arith.mulf %245, %31 : vector<32x256xf32>
    %248 = arith.addf %244, %247 : vector<32x256xf32>
    %249 = arith.mulf %246, %37 : vector<32x256xf32>
    %250 = arith.addf %248, %249 : vector<32x256xf32>
    %251 = vector.broadcast %5 : vector<1x256xf32> to vector<32x256xf32>
    %252 = arith.addf %250, %251 : vector<32x256xf32>
    %253 = arith.addf %252, %0 : vector<32x256xf32>
    %c0_83 = arith.constant 0 : index
    %c0_84 = arith.constant 0 : index
    %254 = vector.load %arg8[%c0_83, %c0_84] : memref<32x256xf32, #tpu.memory_space<vmem>>, vector<32x256xf32>
    tpu.vector_store %arg8[%c0_83, %c0_84], %253 {strides = array<i32>} : memref<32x256xf32, #tpu.memory_space<vmem>>, vector<32x256xf32>,
    return
  }
  func.func @transform_0(%arg0: i32) -> (i32, i32) {
    %c0_i32 = arith.constant 0 : i32
    %c0_i32_0 = arith.constant 0 : i32
    return %arg0, %c0_i32 : i32, i32
  }
  func.func @transform_1(%arg0: i32) -> (i32, i32) {
    %c0_i32 = arith.constant 0 : i32
    %c0_i32_0 = arith.constant 0 : i32
    %c0_i32_1 = arith.constant 0 : i32
    return %c0_i32, %c0_i32_0 : i32, i32
  }
  func.func @transform_2(%arg0: i32) -> (i32, i32, i32) {
    %c0_i32 = arith.constant 0 : i32
    %c0_i32_0 = arith.constant 0 : i32
    %c0_i32_1 = arith.constant 0 : i32
    %c0_i32_2 = arith.constant 0 : i32
    return %c0_i32, %c0_i32_0, %c0_i32_1 : i32, i32, i32
  }
  func.func @transform_3(%arg0: i32) -> (i32, i32, i32) {
    %c0_i32 = arith.constant 0 : i32
    %c0_i32_0 = arith.constant 0 : i32
    %c0_i32_1 = arith.constant 0 : i32
    %c0_i32_2 = arith.constant 0 : i32
    return %c0_i32, %c0_i32_0, %c0_i32_1 : i32, i32, i32
  }
  func.func @transform_4(%arg0: i32) -> (i32, i32, i32) {
    %c0_i32 = arith.constant 0 : i32
    %c0_i32_0 = arith.constant 0 : i32
    %c0_i32_1 = arith.constant 0 : i32
    %c0_i32_2 = arith.constant 0 : i32
    return %c0_i32, %c0_i32_0, %c0_i32_1 : i32, i32, i32
  }
  func.func @transform_5(%arg0: i32) -> (i32, i32, i32) {
    %c0_i32 = arith.constant 0 : i32
    %c0_i32_0 = arith.constant 0 : i32
    %c0_i32_1 = arith.constant 0 : i32
    %c0_i32_2 = arith.constant 0 : i32
    return %c0_i32, %c0_i32_0, %c0_i32_1 : i32, i32, i32
  }
  func.func @transform_6(%arg0: i32) -> (i32, i32, i32) {
    %c0_i32 = arith.constant 0 : i32
    %c0_i32_0 = arith.constant 0 : i32
    %c0_i32_1 = arith.constant 0 : i32
    %c0_i32_2 = arith.constant 0 : i32
    return %c0_i32, %c0_i32_0, %c0_i32_1 : i32, i32, i32
  }
  func.func @transform_7(%arg0: i32) -> (i32, i32) {
    %c0_i32 = arith.constant 0 : i32
    %c0_i32_0 = arith.constant 0 : i32
    return %arg0, %c0_i32 : i32, i32
  }
}

</mosaic_0001>

<bundles_post_ra>
// kernel: tpu_custom_call.1
= control target key start
LH: loop header
LB: loop body
LE: loop exit
PB: predicated region body
PF: predicated region fallthrough
CT: control target
= control target key end

     0   :  { %12 = vsyncpa [#allocation3], 0  ;;  %s4380_s0 = inlined_call_operand.vmem [shape: f32[32,256], index: 0, kind: input, shape index: {}]   ;;  %s4381_s1 = inlined_call_operand.vmem [shape: f32[11,256], index: 1, kind: input, shape index: {}]   ;;  %s4382_s2 = inlined_call_operand.vmem [shape: bf16[3,256,64], index: 2, kind: input, shape index: {}]   ;;  %s4383_s3 = inlined_call_operand.vmem [shape: bf16[3,64,64], index: 3, kind: input, shape index: {}]   ;;  %s4384_s4 = inlined_call_operand.vmem [shape: bf16[3,64,256], index: 4, kind: input, shape index: {}]   ;;  %s4385_s5 = inlined_call_operand.vmem [shape: bf16[3,64,256], index: 5, kind: input, shape index: {}]   ;;  %s4386_s6 = inlined_call_operand.hbm [shape: bf16[2,64,64], index: 6, kind: input, shape index: {}]   ;;  %s4387_s7 = inlined_call_operand.hbm [shape: f32[32,256], index: 7, kind: output, shape index: {}]  }
   0x1   :  { %13 = vsyncpa [#allocation4], 0  ;;  %s30_s26 = sshll.u32 %s4386_s6, 4  ;;  %s3278_s27 = smov [#allocation2]   ;;  %s31_s26 = int_to_ptr.hbm [resolvable:$true] %s30_s26 }
   0x2   :  { %s32_s28 = sshll.u32 %s3278_s27, 4  ;;  %s3279_s29 = smov 64   ;;  %s33_s28 = int_to_ptr.vmem [resolvable:$true] %s32_s28 }
   0x3   :  { %s3280_s30 = smov 4  }
   0x4   :  { %38 = dma.hbm_to_vmem [thread:$0]  %s31_s26, 1024, %s33_s28, [#allocation3], %s3279_s29, %s3279_s29, %s3280_s30  }
   0x5   :  { %3274 = dma.done.wait [#allocation3], 1024  }
   0x6   :  { %3275 = vsyncadd [#allocation3], 4294966272  ;;  %v3040_v0 = vld [vmem:[%s4382_s2 + $0x38] sm:$0xff]  ;;  %v3039_v4 = vld [vmem:[%s4382_s2 + $0x30] sm:$0xff]  ;;  %v55_v16 = vlaneseq  ;;  %vm838_vm14 = vcmask 523264   ;;  %s3283_s23 = smov 120  }
   0x7   :  { %v3048_v1 = vld [vmem:[%s4382_s2 + $0x78] sm:$0xff]  ;;  %339 = vmatpush.bf16.msra.mxu0 %v3040_v0  ;;  %v3047_v5 = vld [vmem:[%s4382_s2 + $0x70] sm:$0xff]  ;;  %v3038_v8 = vld [vmem:[%s4382_s2 + $0x28] sm:$0xff]  ;;  %s3284_s24 = smov 116   ;;  %s3285_s25 = smov 112  }
   0x8   :  { %v3056_v2 = vld [vmem:[%s4382_s2 + $0x138] sm:$0xff]  ;;  %358 = vmatpush.bf16.msra.mxu1 %v3048_v1  ;;  %v3055_v6 = vld [vmem:[%s4382_s2 + $0x130] sm:$0xff]  ;;  %v3046_v9 = vld [vmem:[%s4382_s2 + $0x68] sm:$0xff]  ;;  %v3416_v25 = vshrl.u32 %v55_v16, 7  ;;  %s3286_s26 = smov 108   ;;  %s3287_s27 = smov 104  }
   0x9   :  { %v3064_v3 = vld [vmem:[%s4382_s2 + $0x178] sm:$0xff]  ;;  %506 = vmatpush.bf16.msra.mxu2 %v3056_v2  ;;  %v3063_v7 = vld [vmem:[%s4382_s2 + $0x170] sm:$0xff]  ;;  %v3054_v10 = vld [vmem:[%s4382_s2 + $0x128] sm:$0xff]  ;;  %s3288_s28 = smov 100   ;;  %s3289_s29 = smov 96  }
   0xa   :  { %525 = vmatpush.bf16.msra.mxu3 %v3064_v3  ;;  %v3062_v11 = vld [vmem:[%s4382_s2 + $0x168] sm:$0xff]  ;;  %v3037_v12 = vld [vmem:[%s4382_s2 + $0x20] sm:$0xff]  ;;  %v3036_v17 = vld [vmem:[%s4382_s2 + $0x18] sm:$0xff]  ;;  %vm144_vm0 = vcmp.lt.s32.totalorder %v3416_v25, 1  ;;  %vm165_vm1 = vcmp.lt.s32.totalorder %v3416_v25, 7  ;;  %s3290_s30 = smov 92  }
   0xb   :  { %340 = vmatpush.bf16.msra.mxu0 %v3039_v4  ;;  %v3045_v13 = vld [vmem:[%s4382_s2 + $0x60] sm:$0xff]  ;;  %v3044_v18 = vld [vmem:[%s4382_s2 + $0x58] sm:$0xff]  ;;  %v3035_v21 = vld [vmem:[%s4382_s2 + $0x10] sm:$0xff]  ;;  %s3291_s8 = smov 88   ;;  %s3292_s9 = smov 84  }
   0xc   :  { %359 = vmatpush.bf16.msra.mxu1 %v3047_v5  ;;  %v3053_v14 = vld [vmem:[%s4382_s2 + $0x120] sm:$0xff]  ;;  %v3052_v19 = vld [vmem:[%s4382_s2 + $0x118] sm:$0xff]  ;;  %v3043_v22 = vld [vmem:[%s4382_s2 + $0x50] sm:$0xff]  ;;  %s3293_s10 = smov 80   ;;  %s3294_s11 = smov 76  }
   0xd   :  { %507 = vmatpush.bf16.msra.mxu2 %v3055_v6  ;;  %v3061_v15 = vld [vmem:[%s4382_s2 + $0x160] sm:$0xff]  ;;  %v3060_v20 = vld [vmem:[%s4382_s2 + $0x158] sm:$0xff]  ;;  %v3051_v23 = vld [vmem:[%s4382_s2 + $0x110] sm:$0xff]  ;;  %s3295_s12 = smov 72   ;;  %s3296_s13 = smov 68  }
   0xe   :  { %526 = vmatpush.bf16.msra.mxu3 %v3063_v7  ;;  %v3059_v24 = vld [vmem:[%s4382_s2 + $0x150] sm:$0xff]  ;;  %v3421_v26 = vld [vmem:[%s4380_s0] sm:$0xff]  ;;  %v3436_v29 = vld [vmem:[%s4380_s0 + $0x8] sm:$0xff]  ;;  %s2370_s15 = sshll.u32 %s4387_s7, 4  ;;  %s3298_s18 = smov 256   ;;  %s2371_s15 = int_to_ptr.hbm [resolvable:$true] %s2370_s15 }
   0xf   :  { %341 = vmatpush.bf16.msra.mxu0 %v3038_v8  ;;  %v3426_v27 = vld [vmem:[%s4380_s0 + $0x10] sm:$0xff]  ;;  %v3441_v30 = vld [vmem:[%s4380_s0 + $0x18] sm:$0xff]  ;;  %v3451_v32 = vld [vmem:[%s4380_s0 + $0x20] sm:$0xff]  ;;  %v136_v33 = vrot.slane %v3421_v26, 7  ;;  %v137_v39 = vrot.slane %v3436_v29, 7  ;;  %v157_v44 = vrot.slane %v3421_v26, 1 }
  0x10   :  { %360 = vmatpush.bf16.msra.mxu1 %v3046_v9  ;;  %v3431_v28 = vld [vmem:[%s4380_s0 + $0x30] sm:$0xff]  ;;  %v3446_v31 = vld [vmem:[%s4380_s0 + $0x38] sm:$0xff]  ;;  %v138_v34 = vrot.slane %v3426_v27, 7  ;;  %v3459_v35 = vld [vmem:[%s4380_s0 + $0x28] sm:$0xff]  ;;  %v139_v40 = vrot.slane %v3441_v30, 7  ;;  %v159_v45 = vrot.slane %v3426_v27, 1 }
  0x11   :  { %508 = vmatpush.bf16.msra.mxu2 %v3054_v10  ;;  %v3034_v36 = vld [vmem:[%s4382_s2 + $0x8] sm:$0xff]  ;;  %v142_v38 = vrot.slane %v3431_v28, 7  ;;  %v143_v41 = vrot.slane %v3446_v31, 7  ;;  %v161_v46 = vrot.slane %v3451_v32, 1  ;;  %v158_v47 = vrot.slane %v3436_v29, 1  ;;  %v3033_v51 = vld [vmem:[%s4382_s2] sm:$0xff] }
  0x12   :  { %527 = vmatpush.bf16.msra.mxu3 %v3062_v11  ;;  %v3042_v37 = vld [vmem:[%s4382_s2 + $0x48] sm:$0xff]  ;;  %v160_v48 = vrot.slane %v3441_v30, 1  ;;  %v162_v49 = vrot.slane %v3459_v35, 1  ;;  %v149_v50 = vsel %vm144_vm0, %v136_v33, %v138_v34  ;;  %v3041_v52 = vld [vmem:[%s4382_s2 + $0x40] sm:$0xff]  ;;  %v150_v54 = vsel %vm144_vm0, %v137_v39, %v139_v40  ;;  %v3024_v56 = vld [vmem:[%s4382_s2 + $0xb8] sm:$0xff]  ;;  %s3299_s19 = smov 16  }
  0x13   :  { %342 = vmatpush.bf16.msra.mxu0 %v3037_v12  ;;  %v3050_v42 = vld [vmem:[%s4382_s2 + $0x108] sm:$0xff]  ;;  %v151_v53 = vsel %vm144_vm0, %v142_v38, %v136_v33  ;;  %v152_v55 = vsel %vm144_vm0, %v143_v41, %v137_v39  ;;  %v3049_v57 = vld [vmem:[%s4382_s2 + $0x100] sm:$0xff]  ;;  %v168_v58 = vsel %vm165_vm1, %v159_v45, %v161_v46  ;;  %v170_v59 = vsel %vm165_vm1, %v157_v44, %v159_v45  ;;  %v3032_v61 = vld [vmem:[%s4382_s2 + $0xf8] sm:$0xff] }
  0x14   :  { %361 = vmatpush.bf16.msra.mxu1 %v3045_v13  ;;  %v3058_v43 = vld [vmem:[%s4382_s2 + $0x148] sm:$0xff]  ;;  %v3057_v60 = vld [vmem:[%s4382_s2 + $0x140] sm:$0xff]  ;;  %v169_v62 = vsel %vm165_vm1, %v160_v48, %v162_v49  ;;  %v171_v63 = vsel %vm165_vm1, %v158_v47, %v160_v48  ;;  %v153_v0 = vpack.c.bf16 %v149_v50, %v151_v53  ;;  %v154_v1 = vpack.c.bf16 %v150_v54, %v152_v55  ;;  %v3023_v4 = vld [vmem:[%s4382_s2 + $0xb0] sm:$0xff] }
  0x15   :  { %509 = vmatpush.bf16.msra.mxu2 %v3053_v14  ;;  %v174_v2 = vpack.c.bf16 %v168_v58, %v170_v59  ;;  %v175_v3 = vpack.c.bf16 %v169_v62, %v171_v63  ;;  %v3031_v5 = vld [vmem:[%s4382_s2 + $0xf0] sm:$0xff]  ;;  %v3022_v6 = vld [vmem:[%s4382_s2 + $0xa8] sm:$0xff]  ;;  %v140_v8 = vrot.slane %v3451_v32, 7  ;;  %v141_v9 = vrot.slane %v3459_v35, 7  ;;  %v3021_v10 = vld [vmem:[%s4382_s2 + $0xa0] sm:$0xff] }
  0x16   :  { %528 = vmatpush.bf16.msra.mxu3 %v3061_v15  ;;  %v3030_v7 = vld [vmem:[%s4382_s2 + $0xe8] sm:$0xff]  ;;  %v163_v11 = vrot.slane %v3431_v28, 1  ;;  %v3029_v12 = vld [vmem:[%s4382_s2 + $0xe0] sm:$0xff]  ;;  %v164_v13 = vrot.slane %v3446_v31, 1  ;;  %v3027_v39 = vld [vmem:[%s4382_s2 + $0xd0] sm:$0xff]  ;;  %v133_v45 = vpack.c.bf16 %v3441_v30, %v3436_v29  ;;  %v64_v30 = vand.u32 15, %v3416_v25 }
  0x17   :  { %343 = vmatpush.bf16.msra.mxu0 %v3036_v17  ;;  %v145_v14 = vsel %vm144_vm0, %v140_v8, %v142_v38  ;;  %v147_v15 = vsel %vm144_vm0, %v138_v34, %v140_v8  ;;  %v146_v17 = vsel %vm144_vm0, %v141_v9, %v143_v41  ;;  %v3019_v38 = vld [vmem:[%s4382_s2 + $0x90] sm:$0xff]  ;;  %v3026_v41 = vld [vmem:[%s4382_s2 + $0xc8] sm:$0xff] }
  0x18   :  { %362 = vmatpush.bf16.msra.mxu1 %v3044_v18  ;;  %v148_v18 = vsel %vm144_vm0, %v139_v40, %v141_v9  ;;  %v155_v33 = vpack.c.bf16 %v145_v14, %v147_v15  ;;  %v3018_v40 = vld [vmem:[%s4382_s2 + $0x88] sm:$0xff]  ;;  %vm108_vm2 = vcmp.ge.s32.totalorder %v64_v30, 1  ;;  %v3073_v30 = vld [vmem:[%s4383_s3 + $0x40] sm:$0xff] }
  0x19   :  { %510 = vmatpush.bf16.msra.mxu2 %v3052_v19  ;;  %v3020_v19 = vld [vmem:[%s4382_s2 + $0x98] sm:$0xff]  ;;  %v156_v34 = vpack.c.bf16 %v146_v17, %v148_v18  ;;  %v3066_v18 = vld [vmem:[%s4383_s3 + $0x28] sm:$0xff] }
  0x1a   :  { %529 = vmatpush.bf16.msra.mxu3 %v3060_v20  ;;  %v166_v20 = vsel %vm165_vm1, %v161_v46, %v163_v11  ;;  %v135_v46 = vpack.c.bf16 %v3446_v31, %v3459_v35 }
  0x1b   :  { %344 = vmatpush.bf16.msra.mxu0 %v3035_v21  ;;  %v172_v21 = vsel %vm165_vm1, %v163_v11, %v157_v44  ;;  %v132_v44 = vpack.c.bf16 %v3426_v27, %v3421_v26 }
  0x1c   :  { %363 = vmatpush.bf16.msra.mxu1 %v3043_v22  ;;  %v3028_v22 = vld [vmem:[%s4382_s2 + $0xd8] sm:$0xff] }
  0x1d   :  { %511 = vmatpush.bf16.msra.mxu2 %v3051_v23  ;;  %v167_v23 = vsel %vm165_vm1, %v162_v49, %v164_v13 }
  0x1e   :  { %530 = vmatpush.bf16.msra.mxu3 %v3059_v24  ;;  %v173_v24 = vsel %vm165_vm1, %v164_v13, %v158_v47  ;;  %v134_v47 = vpack.c.bf16 %v3431_v28, %v3451_v32  ;;  %v3281_v28 = vmov 0.0  }
  0x1f   :  { %345 = vmatpush.bf16.msra.mxu0 %v3034_v36  ;;  %v176_v36 = vpack.c.bf16 %v172_v21, %v166_v20  ;;  %v3618_v32 = vsel %vm108_vm2, 1.0, %v3281_v28 }
  0x20   :  { %364 = vmatpush.bf16.msra.mxu1 %v3042_v37  ;;  %v177_v37 = vpack.c.bf16 %v173_v24, %v167_v23  ;;  %v3076_v24 = vld [vmem:[%s4383_s3 + $0x58] sm:$0xff] }
  0x21   :  { %512 = vmatpush.bf16.msra.mxu2 %v3050_v42  ;;  %v3017_v42 = vld [vmem:[%s4382_s2 + $0x80] sm:$0xff] }
  0x22   :  { %531 = vmatpush.bf16.msra.mxu3 %v3058_v43  ;;  %v3025_v43 = vld [vmem:[%s4382_s2 + $0xc0] sm:$0xff] }
  0x23   :  { %346 = vmatpush.bf16.msra.mxu0 %v3033_v51 }
  0x24   :  { %365 = vmatpush.bf16.msra.mxu1 %v3041_v52 }
  0x25   :  { %513 = vmatpush.bf16.msra.mxu2 %v3049_v57 }
  0x26   :  { %532 = vmatpush.bf16.msra.mxu3 %v3057_v60  ;;  %347 = vmatmul.bf16.vlgmr.msra.gmra.mxu0 %v153_v0  ;;  %v3625_v60 = vld [vmem:[%s4381_s1] sm:$0xff]  ;;  %v58_v0 = vadd.s32 16, %v3416_v25 }
  0x27   :  { %644 = vmatpush.bf16.msrb.mxu0 %v3024_v56  ;;  %366 = vmatmul.bf16.vlgmr.msra.gmra.mxu1 %v154_v1  ;;  %v57_v56 = vadd.s32 8, %v3416_v25  ;;  %v3068_v1 = vld [vmem:[%s4383_s3 + $0x38] sm:$0xff] }
  0x28   :  { %663 = vmatpush.bf16.msrb.mxu1 %v3032_v61  ;;  %514 = vmatmul.bf16.vlgmr.msra.gmra.mxu2 %v174_v2 }
  0x29   :  { %533 = vmatmul.bf16.vlgmr.msra.gmra.mxu3 %v175_v3  ;;  %v71_v62 = vand.u32 15, %v57_v56 }
  0x2a   :  { %3133 = vmatpush.bf16.msrb.mxu3 %v3032_v61 }
  0x2b   :  { %645 = vmatpush.bf16.msrb.mxu0 %v3023_v4  ;;  %v3632_v4 = vperm.slane %v3625_v60, 0  ;;  %vm121_vm3 = vcmp.le.s32.totalorder %v71_v62, 14 }
  0x2c   :  { %664 = vmatpush.bf16.msrb.mxu1 %v3031_v5 }
  0x2e   :  { %3134 = vmatpush.bf16.msrb.mxu3 %v3031_v5 }
  0x2f   :  { %646 = vmatpush.bf16.msrb.mxu0 %v3022_v6  ;;  %v78_v6 = vand.u32 15, %v58_v0 }
  0x30   :  { %665 = vmatpush.bf16.msrb.mxu1 %v3030_v7 }
  0x31   :  { %vm110_vm4 = vcmp.ge.s32.totalorder %v78_v6, 1 }
  0x32   :  { %3135 = vmatpush.bf16.msrb.mxu3 %v3030_v7  ;;  %v3067_v7 = vld [vmem:[%s4383_s3 + $0x30] sm:$0xff]  ;;  %v3649_v23 = vsel %vm110_vm4, 1.0, %v3281_v28 }
  0x33   :  { %647 = vmatpush.bf16.msrb.mxu0 %v3021_v10 }
  0x34   :  { %666 = vmatpush.bf16.msrb.mxu1 %v3029_v12 }
  0x36   :  { %3136 = vmatpush.bf16.msrb.mxu3 %v3029_v12  ;;  %352 = vmatmul.bf16.gmra.mxu0 %v155_v33  ;;  %v3641_v12 = vsel %vm121_vm3, 1.0, %v3281_v28  ;;  %v59_v33 = vadd.s32 24, %v3416_v25 }
  0x37   :  { %648 = vmatpush.bf16.msrb.mxu0 %v3020_v19  ;;  %371 = vmatmul.bf16.gmra.mxu1 %v156_v34 }
  0x38   :  { %667 = vmatpush.bf16.msrb.mxu1 %v3028_v22  ;;  %519 = vmatmul.bf16.gmra.mxu2 %v176_v36  ;;  %v3065_v36 = vld [vmem:[%s4383_s3 + $0x20] sm:$0xff] }
  0x39   :  { %538 = vmatmul.bf16.gmra.mxu3 %v177_v37 }
  0x3a   :  { %3137 = vmatpush.bf16.msrb.mxu3 %v3028_v22 }
  0x3b   :  { %649 = vmatpush.bf16.msrb.mxu0 %v3019_v38 }
  0x3c   :  { %668 = vmatpush.bf16.msrb.mxu1 %v3027_v39 }
  0x3e   :  { %3138 = vmatpush.bf16.msrb.mxu3 %v3027_v39 }
  0x3f   :  { %650 = vmatpush.bf16.msrb.mxu0 %v3018_v40 }
  0x40   :  { %669 = vmatpush.bf16.msrb.mxu1 %v3026_v41 }
  0x42   :  { %3139 = vmatpush.bf16.msrb.mxu3 %v3026_v41  ;;  %v3075_v41 = vld [vmem:[%s4383_s3 + $0x50] sm:$0xff] }
  0x43   :  { %651 = vmatpush.bf16.msrb.mxu0 %v3017_v42 }
  0x44   :  { %670 = vmatpush.bf16.msrb.mxu1 %v3025_v43 }
  0x46   :  { %3140 = vmatpush.bf16.msrb.mxu3 %v3025_v43  ;;  %652 = vmatmul.bf16.vlgmr.msrb.gmra.mxu0 %v132_v44  ;;  %v85_v43 = vand.u32 15, %v59_v33 }
  0x47   :  { %671 = vmatmul.bf16.vlgmr.msrb.gmra.mxu1 %v133_v45  ;;  %960 = vmatpush.bf16.msra.mxu0 %v3068_v1 }
  0x48   :  { %vm123_vm5 = vcmp.le.s32.totalorder %v85_v43, 14 }
  0x49   :  { %676 = vmatmul.bf16.vlgmr.msrb.gmra.mxu3 %v135_v46 }
  0x4a   :  { %907 = vmatpush.bf16.msra.mxu3 %v3076_v24 }
  0x4b   :  { %961 = vmatpush.bf16.msra.mxu0 %v3067_v7 }
  0x4e   :  { %908 = vmatpush.bf16.msra.mxu3 %v3075_v41 }
  0x4f   :  { %962 = vmatpush.bf16.msra.mxu0 %v3066_v18 }
  0x53   :  { %963 = vmatpush.bf16.msra.mxu0 %v3065_v36 }
  0x56   :  { %657 = vmatmul.bf16.gmra.mxu0 %v134_v47 }
  0xa3   :  { %v348_v48 = vpop.f32.mrf.mxu0 }
  0xa4   :  { %v367_v49 = vpop.f32.mrf.mxu1 }
  0xa5   :  { %v368_v35 = vadd.f32 %v367_v49, %v348_v48 }
  0xa7   :  { %v544_v58 = vmul.f32 %v3618_v32, %v368_v35  ;;  %v3684_v35 = vsel %vm123_vm5, 1.0, %v3281_v28 }
  0xab   :  { %v350_v50 = vpop.f32.mrf.mxu0  ;;  %v515_v29 = vpop.f32.mrf.mxu2 }
  0xac   :  { %v369_v51 = vpop.f32.mrf.mxu1  ;;  %v534_v52 = vpop.f32.mrf.mxu3 }
  0xad   :  { %v535_v2 = vadd.f32 %v534_v52, %v515_v29  ;;  %v370_v9 = vadd.f32 %v369_v51, %v350_v50  ;;  %v3072_v50 = vld [vmem:[%s4383_s3 + $0x18] sm:$0xff]  ;;  %v3074_v51 = vld [vmem:[%s4383_s3 + $0x48] sm:$0xff]  ;;  %v3071_v29 = vld [vmem:[%s4383_s3 + $0x10] sm:$0xff] }
  0xae   :  { %849 = vmatpush.bf16.msrb.mxu2 %v3072_v50  ;;  %909 = vmatpush.bf16.msra.mxu3 %v3074_v51 }
  0xb2   :  { %850 = vmatpush.bf16.msrb.mxu2 %v3071_v29  ;;  %910 = vmatpush.bf16.msra.mxu3 %v3073_v30 }
  0xb3   :  { %v353_v26 = vpop.f32.mrf.mxu0  ;;  %v517_v57 = vpop.f32.mrf.mxu2 }
  0xb4   :  { %v372_v27 = vpop.f32.mrf.mxu1  ;;  %v536_v53 = vpop.f32.mrf.mxu3 }
  0xb5   :  { %v537_v10 = vadd.f32 %v536_v53, %v517_v57  ;;  %v373_v20 = vadd.f32 %v372_v27, %v353_v26 }
  0xb7   :  { %v683_v21 = vmul.f32 %v3641_v12, %v537_v10  ;;  %v546_v38 = vmul.f32 %v3649_v23, %v373_v20 }
  0xbb   :  { %v3613_v54 = vpop.f32.mrf.mxu0  ;;  %v520_v19 = vpop.f32.mrf.mxu2 }
  0xbc   :  { %v3615_v31 = vpop.f32.mrf.mxu1  ;;  %v539_v55 = vpop.f32.mrf.mxu3 }
  0xbd   :  { %v540_v47 = vadd.f32 %v539_v55, %v520_v19  ;;  %v375_v26 = vadd.f32 %v3615_v31, %v3613_v54 }
  0xc3   :  { %v653_v59 = vpop.f32.mrf.mxu0  ;;  %v522_v49 = vpop.f32.mrf.mxu2 }
  0xc4   :  { %v672_v61 = vpop.f32.mrf.mxu1  ;;  %v654_v63 = vadd.f32 %v653_v59, %v544_v58  ;;  %v541_v8 = vpop.f32.mrf.mxu3 }
  0xc5   :  { %v542_v27 = vadd.f32 %v541_v8, %v522_v49 }
  0xc6   :  { %v673_v3 = vadd.f32 %v672_v61, %v654_v63  ;;  %v3070_v61 = vld [vmem:[%s4383_s3 + $0x8] sm:$0xff] }
  0xc7   :  { %v685_v62 = vmul.f32 %v3684_v35, %v542_v27  ;;  %851 = vmatpush.bf16.msrb.mxu2 %v3070_v61 }
  0xc8   :  { %v686_v5 = vadd.f32 %v673_v3, %v535_v2  ;;  %v3069_v3 = vld [vmem:[%s4383_s3] sm:$0xff]  ;;  %s3282_s3 = smov 124  }
  0xca   :  { %v3638_v11 = vadd.f32 %v3632_v4, %v686_v5 }
  0xcb   :  { %v655_v13 = vpop.f32.mrf.mxu0  ;;  %852 = vmatpush.bf16.msrb.mxu2 %v3069_v3 }
  0xcc   :  { %v674_v14 = vpop.f32.mrf.mxu1  ;;  %v2643_v15 = vmul.f32 -1.442695, %v3638_v11  ;;  %v656_v17 = vadd.f32 %v655_v13, %v370_v9  ;;  %v677_v39 = vpop.f32.mrf.mxu3 }
  0xce   :  { %3165 = vpow2.f32 %v2643_v15  ;;  %v675_v22 = vadd.f32 %v674_v14, %v656_v17 }
  0xd0   :  { %v687_v34 = vadd.f32 %v683_v21, %v675_v22 }
  0xd2   :  { %v3659_v37 = vadd.f32 %v3632_v4, %v687_v34 }
  0xd3   :  { %v658_v40 = vpop.f32.mrf.mxu0 }
  0xd4   :  { %v3166_v42 = vpop.eup %3165  ;;  %v2644_v44 = vmul.f32 -1.442695, %v3659_v37  ;;  %v659_v45 = vadd.f32 %v658_v40, %v546_v38  ;;  %v679_v59 = vpop.f32.mrf.mxu3 }
  0xd5   :  { %v707_v46 = vadd.f32 1.0, %v3166_v42 }
  0xd6   :  { %3167 = vpow2.f32 %v2644_v44  ;;  %v678_v48 = vadd.f32 %v677_v39, %v659_v45 }
  0xd7   :  { %3169 = vrcp.f32 %v707_v46  ;;  %v722_v15 = vand.u32 2147483648, %v707_v46  ;;  %vm716_vm7 = vweird.f32 %v707_v46  ;;  %v720_v17 = vand.u32 2147483647, %v707_v46 }
  0xd8   :  { %v688_v52 = vadd.f32 %v678_v48, %v540_v47 }
  0xd9   :  { %v723_v22 = vor.u32 1.1754944e-38, %v722_v15  ;;  %vm721_vm10 = vcmp.eq.f32.partialorder %v720_v17, 8.507059e+37 }
  0xda   :  { %v3675_v53 = vadd.f32 %v3632_v4, %v688_v52 }
  0xdb   :  { %v660_v55 = vpop.f32.mrf.mxu0 }
  0xdc   :  { %v3168_v56 = vpop.eup %3167  ;;  %v2645_v57 = vmul.f32 -1.442695, %v3675_v53  ;;  %v661_v54 = vadd.f32 %v660_v55, %v375_v26 }
  0xdd   :  { %v3170_v31 = vpop.eup %3169  ;;  %v708_v58 = vadd.f32 1.0, %v3168_v56 }
  0xde   :  { %v712_v63 = vmul.f32 %v3170_v31, %v707_v46  ;;  %3171 = vpow2.f32 %v2645_v57  ;;  %v680_v0 = vadd.f32 %v679_v59, %v661_v54  ;;  %vm717_vm6 = vweird.f32 %v3170_v31 }
  0xdf   :  { %3173 = vrcp.f32 %v708_v58  ;;  %vm718_vm8 = vmor %vm716_vm7, %vm717_vm6  ;;  %v737_v19 = vand.u32 2147483648, %v708_v58  ;;  %v735_v21 = vand.u32 2147483647, %v708_v58  ;;  %vm731_vm11 = vweird.f32 %v708_v58 }
  0xe0   :  { %v713_v1 = vsub.f32 1.0, %v712_v63  ;;  %v689_v2 = vadd.f32 %v685_v62, %v680_v0 }
  0xe1   :  { %v738_v38 = vor.u32 1.1754944e-38, %v737_v19  ;;  %vm736_vm13 = vcmp.eq.f32.partialorder %v735_v21, 8.507059e+37 }
  0xe2   :  { %v714_v5 = vmul.f32 %v3170_v31, %v713_v1  ;;  %v3695_v6 = vadd.f32 %v3632_v4, %v689_v2 }
  0xe4   :  { %v3172_v7 = vpop.eup %3171  ;;  %v2646_v8 = vmul.f32 -1.442695, %v3695_v6  ;;  %v715_v13 = vadd.f32 %v3170_v31, %v714_v5 }
  0xe5   :  { %v3174_v9 = vpop.eup %3173  ;;  %v709_v10 = vadd.f32 1.0, %v3172_v7 }
  0xe6   :  { %v727_v14 = vmul.f32 %v3174_v9, %v708_v58  ;;  %3175 = vpow2.f32 %v2646_v8  ;;  %v719_v20 = vsel %vm718_vm8, %v3170_v31, %v715_v13  ;;  %vm732_vm9 = vweird.f32 %v3174_v9 }
  0xe7   :  { %3177 = vrcp.f32 %v709_v10  ;;  %v724_v36 = vsel %vm721_vm10, %v723_v22, %v719_v20  ;;  %vm733_vm12 = vmor %vm731_vm11, %vm732_vm9  ;;  %v752_v46 = vand.u32 2147483648, %v709_v10  ;;  %v750_v49 = vand.u32 2147483647, %v709_v10 }
  0xe8   :  { %v728_v18 = vsub.f32 1.0, %v727_v14  ;;  %v771_v43 = vmul.f32 %v724_v36, %v3638_v11  ;;  %vm746_vm2 = vweird.f32 %v709_v10 }
  0xe9   :  { %v753_v52 = vor.u32 1.1754944e-38, %v752_v46  ;;  %vm751_vm4 = vcmp.eq.f32.partialorder %v750_v49, 8.507059e+37 }
  0xea   :  { %v729_v4 = vmul.f32 %v3174_v9, %v728_v18  ;;  %v787_v55 = vrot.slane %v771_v43, 1  ;;  %v777_v3 = vrot.slane %v771_v43, 7 }
  0xec   :  { %v3176_v24 = vpop.eup %3175  ;;  %v730_v33 = vadd.f32 %v3174_v9, %v729_v4 }
  0xed   :  { %v3178_v34 = vpop.eup %3177  ;;  %v710_v39 = vadd.f32 1.0, %v3176_v24 }
  0xee   :  { %v734_v40 = vsel %vm733_vm12, %v3174_v9, %v730_v33  ;;  %v742_v41 = vmul.f32 %v3178_v34, %v709_v10  ;;  %vm747_vm15 = vweird.f32 %v3178_v34 }
  0xef   :  { %v739_v42 = vsel %vm736_vm13, %v738_v38, %v734_v40  ;;  %3179 = vrcp.f32 %v710_v39  ;;  %vm748_vm3 = vmor %vm746_vm2, %vm747_vm15  ;;  %v767_v56 = vand.u32 2147483648, %v710_v39  ;;  %v765_v31 = vand.u32 2147483647, %v710_v39 }
  0xf0   :  { %v772_v44 = vmul.f32 %v739_v42, %v3659_v37  ;;  %v743_v45 = vsub.f32 1.0, %v742_v41  ;;  %vm761_vm6 = vweird.f32 %v710_v39 }
  0xf1   :  { %v768_v63 = vor.u32 1.1754944e-38, %v767_v56  ;;  %vm766_vm8 = vcmp.eq.f32.partialorder %v765_v31, 8.507059e+37 }
  0xf2   :  { %v775_v47 = vpack.c.bf16 %v772_v44, %v771_v43  ;;  %v744_v48 = vmul.f32 %v3178_v34, %v743_v45  ;;  %v788_v29 = vrot.slane %v772_v44, 1  ;;  %v778_v1 = vrot.slane %v772_v44, 7 }
  0xf4   :  { %v745_v50 = vadd.f32 %v3178_v34, %v744_v48  ;;  %2715 = vmatmul.msk.bf16.vlgmr.msra.gmra.mxu0 %vm838_vm14, %v775_v47  ;;  %v793_v59 = vsel %vm165_vm1, %v787_v55, %v788_v29  ;;  %v783_v8 = vsel %vm144_vm0, %v777_v3, %v778_v1 }
  0xf5   :  { %v3180_v51 = vpop.eup %3179 }
  0xf6   :  { %v749_v26 = vsel %vm748_vm3, %v3178_v34, %v745_v50  ;;  %v757_v27 = vmul.f32 %v3180_v51, %v710_v39  ;;  %vm762_vm5 = vweird.f32 %v3180_v51  ;;  %v3726_v34 = vperm.slane %v3625_v60, 1 }
  0xf7   :  { %v754_v11 = vsel %vm751_vm4, %v753_v52, %v749_v26  ;;  %vm763_vm7 = vmor %vm761_vm6, %vm762_vm5 }
  0xf8   :  { %v773_v37 = vmul.f32 %v754_v11, %v3675_v53  ;;  %v758_v30 = vsub.f32 1.0, %v757_v27 }
  0xfa   :  { %v789_v57 = vrot.slane %v773_v37, 1  ;;  %v759_v54 = vmul.f32 %v3180_v51, %v758_v30  ;;  %v779_v17 = vrot.slane %v773_v37, 7 }
  0xfc   :  { %v792_v58 = vsel %vm165_vm1, %v788_v29, %v789_v57  ;;  %v760_v61 = vadd.f32 %v3180_v51, %v759_v54  ;;  %v782_v19 = vsel %vm144_vm0, %v778_v1, %v779_v17 }
  0xfd   :  { %v795_v62 = vpack.c.bf16 %v792_v58, %v793_v59 }
  0xfe   :  { %v764_v0 = vsel %vm763_vm7, %v3180_v51, %v760_v61 }
  0xff   :  { %2697 = vmatmul.msk.bf16.vlgmr.msra.gmra.mxu3 %vm838_vm14, %v795_v62  ;;  %v769_v53 = vsel %vm766_vm8, %v768_v63, %v764_v0 }
 0x100   :  { %v774_v2 = vmul.f32 %v769_v53, %v3695_v6 }
 0x102   :  { %v776_v5 = vpack.c.bf16 %v774_v2, %v773_v37  ;;  %v780_v7 = vrot.slane %v774_v2, 7  ;;  %v790_v13 = vrot.slane %v774_v2, 1 }
 0x104   :  { %2716 = vmatmul.msk.bf16.gmra.mxu0 %vm838_vm14, %v776_v5  ;;  %v784_v9 = vsel %vm144_vm0, %v780_v7, %v777_v3  ;;  %v791_v14 = vsel %vm165_vm1, %v789_v57, %v790_v13  ;;  %v794_v6 = vsel %vm165_vm1, %v790_v13, %v787_v55  ;;  %v781_v18 = vsel %vm144_vm0, %v779_v17, %v780_v7 }
 0x105   :  { %v785_v10 = vpack.c.bf16 %v783_v8, %v784_v9  ;;  %v796_v15 = vpack.c.bf16 %v794_v6, %v791_v14  ;;  %v786_v20 = vpack.c.bf16 %v781_v18, %v782_v19 }
 0x107   :  { %2671 = vmatmul.msk.bf16.vlgmr.msrb.gmra.mxu2 %vm838_vm14, %v785_v10 }
 0x10f   :  { %2698 = vmatmul.msk.bf16.gmra.mxu3 %vm838_vm14, %v796_v15 }
 0x117   :  { %2672 = vmatmul.msk.bf16.gmra.mxu2 %vm838_vm14, %v786_v20 }
 0x171   :  { %v965_v21 = vpop.f32.mrf.mxu0 }
 0x179   :  { %v967_v40 = vpop.f32.mrf.mxu0 }
 0x181   :  { %v970_v11 = vpop.f32.mrf.mxu0 }
 0x182   :  { %v912_v4 = vpop.f32.mrf.mxu3 }
 0x189   :  { %v972_v2 = vpop.f32.mrf.mxu0 }
 0x18a   :  { %v854_v22 = vpop.f32.mrf.mxu2  ;;  %v914_v38 = vpop.f32.mrf.mxu3 }
 0x18b   :  { %v922_v24 = vmul.f32 %v3618_v32, %v854_v22  ;;  %v976_v43 = vmul.f32 %v3641_v12, %v914_v38 }
 0x18d   :  { %v966_v33 = vadd.f32 %v965_v21, %v922_v24 }
 0x18f   :  { %v979_v36 = vadd.f32 %v966_v33, %v912_v4 }
 0x191   :  { %v984_v39 = vadd.f32 %v3726_v34, %v979_v36 }
 0x192   :  { %v856_v41 = vpop.f32.mrf.mxu2  ;;  %v917_v29 = vpop.f32.mrf.mxu3 }
 0x193   :  { %v2717_v42 = vmul.f32 -1.442695, %v984_v39  ;;  %v968_v44 = vadd.f32 %v967_v40, %v856_v41 }
 0x195   :  { %3181 = vpow2.f32 %v2717_v42  ;;  %v980_v45 = vadd.f32 %v976_v43, %v968_v44 }
 0x197   :  { %v985_v46 = vadd.f32 %v3726_v34, %v980_v45 }
 0x199   :  { %v2718_v47 = vmul.f32 -1.442695, %v985_v46 }
 0x19a   :  { %v859_v26 = vpop.f32.mrf.mxu2  ;;  %v919_v5 = vpop.f32.mrf.mxu3 }
 0x19b   :  { %v3182_v48 = vpop.eup %3181  ;;  %3183 = vpow2.f32 %v2718_v47  ;;  %v924_v63 = vmul.f32 %v3649_v23, %v859_v26  ;;  %v978_v6 = vmul.f32 %v3684_v35, %v919_v5 }
 0x19c   :  { %v1000_v49 = vadd.f32 1.0, %v3182_v48 }
 0x19d   :  { %v971_v10 = vadd.f32 %v970_v11, %v924_v63 }
 0x19e   :  { %3185 = vrcp.f32 %v1000_v49  ;;  %v1015_v56 = vand.u32 2147483648, %v1000_v49  ;;  %vm1009_vm10 = vweird.f32 %v1000_v49  ;;  %v1013_v54 = vand.u32 2147483647, %v1000_v49 }
 0x19f   :  { %v981_v19 = vadd.f32 %v971_v10, %v917_v29 }
 0x1a0   :  { %v1016_v61 = vor.u32 1.1754944e-38, %v1015_v56  ;;  %vm1014_vm12 = vcmp.eq.f32.partialorder %v1013_v54, 8.507059e+37 }
 0x1a1   :  { %v3184_v50 = vpop.eup %3183  ;;  %v3749_v40 = vadd.f32 %v3726_v34, %v981_v19 }
 0x1a2   :  { %v1001_v51 = vadd.f32 1.0, %v3184_v50  ;;  %v861_v0 = vpop.f32.mrf.mxu2 }
 0x1a3   :  { %v973_v8 = vadd.f32 %v972_v2, %v861_v0 }
 0x1a4   :  { %v3186_v52 = vpop.eup %3185  ;;  %3187 = vrcp.f32 %v1001_v51  ;;  %v1030_v62 = vand.u32 2147483648, %v1001_v51  ;;  %v1028_v1 = vand.u32 2147483647, %v1001_v51  ;;  %vm1024_vm15 = vweird.f32 %v1001_v51 }
 0x1a5   :  { %v1005_v27 = vmul.f32 %v3186_v52, %v1000_v49  ;;  %vm1010_vm9 = vweird.f32 %v3186_v52  ;;  %v982_v18 = vadd.f32 %v978_v6, %v973_v8 }
 0x1a6   :  { %vm1011_vm11 = vmor %vm1009_vm10, %vm1010_vm9  ;;  %v1031_v9 = vor.u32 1.1754944e-38, %v1030_v62  ;;  %vm1029_vm3 = vcmp.eq.f32.partialorder %v1028_v1, 8.507059e+37 }
 0x1a7   :  { %v1006_v37 = vsub.f32 1.0, %v1005_v27  ;;  %v3746_v36 = vadd.f32 %v3726_v34, %v982_v18 }
 0x1a9   :  { %v1007_v30 = vmul.f32 %v3186_v52, %v1006_v37  ;;  %v2720_v43 = vmul.f32 -1.442695, %v3746_v36 }
 0x1aa   :  { %v3188_v55 = vpop.eup %3187 }
 0x1ab   :  { %v1008_v57 = vadd.f32 %v3186_v52, %v1007_v30  ;;  %v1020_v31 = vmul.f32 %v3188_v55, %v1001_v51  ;;  %vm1025_vm13 = vweird.f32 %v3188_v55  ;;  %3189 = vpow2.f32 %v2720_v43 }
 0x1ac   :  { %vm1026_vm2 = vmor %vm1024_vm15, %vm1025_vm13  ;;  %vm1375_vm13 = vcmask 1043456   ;;  %vm1363_vm15 = vcmask 1041408  }
 0x1ad   :  { %v1012_v58 = vsel %vm1011_vm11, %v3186_v52, %v1008_v57  ;;  %v1021_v59 = vsub.f32 1.0, %v1020_v31 }
 0x1ae   :  { %v1017_v3 = vsel %vm1014_vm12, %v1016_v61, %v1012_v58  ;;  %vm1367_vm12 = vcmask 1042432  }
 0x1af   :  { %v1022_v53 = vmul.f32 %v3188_v55, %v1021_v59  ;;  %v3732_v13 = vmul.f32 %v1017_v3, %v984_v39 }
 0x1b1   :  { %v1023_v7 = vadd.f32 %v3188_v55, %v1022_v53  ;;  %v1068_v20 = vsel %vm838_vm14, %v3732_v13, 0.0  ;;  %v1086_v21 = vsel %vm838_vm14, %v3732_v13, -inf  ;;  %v3190_v34 = vpop.eup %3189 }
 0x1b2   :  { %v1003_v27 = vadd.f32 1.0, %v3190_v34 }
 0x1b3   :  { %v1027_v14 = vsel %vm1026_vm2, %v3188_v55, %v1023_v7  ;;  %vm1360_vm2 = vcmask 1043459  }
 0x1b4   :  { %v1032_v15 = vsel %vm1029_vm3, %v1031_v9, %v1027_v14  ;;  %v1060_v59 = vand.u32 2147483648, %v1003_v27  ;;  %vm1054_vm6 = vweird.f32 %v1003_v27  ;;  %v1058_v62 = vand.u32 2147483647, %v1003_v27 }
 0x1b5   :  { %v3735_v17 = vmul.f32 %v1032_v15, %v985_v46  ;;  %v2719_v46 = vmul.f32 -1.442695, %v3749_v40  ;;  %vm1353_vm3 = vcmask 1041409  }
 0x1b6   :  { %v1061_v1 = vor.u32 1.1754944e-38, %v1060_v59  ;;  %vm1059_vm10 = vcmp.eq.f32.partialorder %v1058_v62, 8.507059e+37 }
 0x1b7   :  { %v1069_v4 = vsel %vm838_vm14, %v3735_v17, 0.0  ;;  %v1087_v22 = vsel %vm838_vm14, %v3735_v17, -inf  ;;  %3191 = vpow2.f32 %v2719_v46 }
 0x1b8   :  { %v1070_v24 = vadd.f32 %v1069_v4, %v1068_v20  ;;  %v1088_v33 = vmax.f32 %v1086_v21, %v1087_v22  ;;  %3193 = vrcp.f32 %v1003_v27 }
 0x1ba   :  { %v1071_v38 = vrot.slane %v1070_v24, 4  ;;  %v1089_v39 = vrot.slane %v1088_v33, 4 }
 0x1bc   :  { %v1072_v41 = vadd.f32 %v1071_v38, %v1070_v24  ;;  %v1090_v42 = vmax.f32 %v1088_v33, %v1089_v39 }
 0x1bd   :  { %v3192_v26 = vpop.eup %3191 }
 0x1be   :  { %v1073_v44 = vrot.slane %v1072_v41, 2  ;;  %v1091_v45 = vrot.slane %v1090_v42, 2  ;;  %v1002_v11 = vadd.f32 1.0, %v3192_v26  ;;  %v3194_v29 = vpop.eup %3193 }
 0x1bf   :  { %v1050_v30 = vmul.f32 %v3194_v29, %v1003_v27  ;;  %vm1055_vm4 = vweird.f32 %v3194_v29 }
 0x1c0   :  { %v1074_v47 = vadd.f32 %v1073_v44, %v1072_v41  ;;  %v1092_v48 = vmax.f32 %v1090_v42, %v1091_v45  ;;  %3195 = vrcp.f32 %v1002_v11  ;;  %v1045_v63 = vand.u32 2147483648, %v1002_v11  ;;  %vm1056_vm7 = vmor %vm1054_vm6, %vm1055_vm4 }
 0x1c1   :  { %v1051_v56 = vsub.f32 1.0, %v1050_v30  ;;  %vm1039_vm8 = vweird.f32 %v1002_v11  ;;  %v1043_v0 = vand.u32 2147483647, %v1002_v11  ;;  %vm1371_vm4 = vcmask 31744  }
 0x1c2   :  { %v1075_v49 = vrot.slane %v1074_v47, 1  ;;  %v1093_v50 = vrot.slane %v1092_v48, 1  ;;  %v1046_v3 = vor.u32 1.1754944e-38, %v1045_v63 }
 0x1c3   :  { %v1052_v54 = vmul.f32 %v3194_v29, %v1051_v56  ;;  %vm1044_vm11 = vcmp.eq.f32.partialorder %v1043_v0, 8.507059e+37 }
 0x1c4   :  { %v3753_v51 = vadd.f32 %v1075_v49, %v1074_v47  ;;  %v3755_v52 = vmax.f32 %v1092_v48, %v1093_v50 }
 0x1c5   :  { %v1053_v58 = vadd.f32 %v3194_v29, %v1052_v54 }
 0x1c6   :  { %1116 = vrot.lane.b32.xlu1 %v3755_v52, %s3282_s3  ;;  %1124 = vrot.lane.b32.xlu2 %v3753_v51, %s3283_s23  ;;  %v3196_v37 = vpop.eup %3195 }
 0x1c7   :  { %1106 = vrot.lane.b32.xlu0 %v3753_v51, %s3282_s3  ;;  %v1035_v55 = vmul.f32 %v3196_v37, %v1002_v11  ;;  %vm1040_vm5 = vweird.f32 %v3196_v37  ;;  %v1057_v53 = vsel %vm1056_vm7, %v3194_v29, %v1053_v58 }
 0x1c8   :  { %vm1041_vm9 = vmor %vm1039_vm8, %vm1040_vm5  ;;  %v1062_v5 = vsel %vm1059_vm10, %v1061_v1, %v1057_v53  ;;  %vm1400_vm5 = vcmask 15360  }
 0x1c9   :  { %v1036_v57 = vsub.f32 1.0, %v1035_v55  ;;  %v3788_v8 = vmul.f32 %v1062_v5, %v3746_v36 }
 0x1cb   :  { %v1037_v31 = vmul.f32 %v3196_v37, %v1036_v57  ;;  %v1078_v10 = vsel %vm838_vm14, %v3788_v8, 0.0  ;;  %v1096_v14 = vsel %vm838_vm14, %v3788_v8, -inf }
 0x1cd   :  { %v1038_v61 = vadd.f32 %v3196_v37, %v1037_v31 }
 0x1ce   :  { %1148 = vrot.lane.b32.xlu1 %v3755_v52, %s3284_s24  ;;  %1164 = vrot.lane.b32.xlu2 %v3755_v52, %s3285_s25 }
 0x1cf   :  { %1132 = vrot.lane.b32.xlu0 %v3755_v52, %s3283_s23  ;;  %v1042_v2 = vsel %vm1041_vm9, %v3196_v37, %v1038_v61 }
 0x1d0   :  { %v1047_v7 = vsel %vm1044_vm11, %v1046_v3, %v1042_v2 }
 0x1d1   :  { %v3795_v9 = vmul.f32 %v1047_v7, %v3749_v40 }
 0x1d3   :  { %v1077_v6 = vsel %vm838_vm14, %v3795_v9, 0.0  ;;  %v1095_v15 = vsel %vm838_vm14, %v3795_v9, -inf }
 0x1d4   :  { %v1079_v18 = vadd.f32 %v1078_v10, %v1077_v6  ;;  %v1097_v19 = vmax.f32 %v1095_v15, %v1096_v14 }
 0x1d6   :  { %1156 = vrot.lane.b32.xlu1 %v3753_v51, %s3285_s25  ;;  %1172 = vrot.lane.b32.xlu2 %v3753_v51, %s3286_s26  ;;  %v1080_v20 = vrot.slane %v1079_v18, 4  ;;  %v1098_v4 = vrot.slane %v1097_v19, 4 }
 0x1d7   :  { %1140 = vrot.lane.b32.xlu0 %v3753_v51, %s3284_s24 }
 0x1d8   :  { %v1081_v21 = vadd.f32 %v1080_v20, %v1079_v18  ;;  %v1099_v22 = vmax.f32 %v1097_v19, %v1098_v4 }
 0x1da   :  { %v1082_v24 = vrot.slane %v1081_v21, 2  ;;  %v1100_v33 = vrot.slane %v1099_v22, 2 }
 0x1dc   :  { %v1083_v36 = vadd.f32 %v1082_v24, %v1081_v21  ;;  %v1101_v38 = vmax.f32 %v1099_v22, %v1100_v33 }
 0x1de   :  { %1196 = vrot.lane.b32.xlu1 %v3755_v52, %s3287_s27  ;;  %1212 = vrot.lane.b32.xlu2 %v3755_v52, %s3288_s28  ;;  %v1084_v39 = vrot.slane %v1083_v36, 1  ;;  %v1102_v40 = vrot.slane %v1101_v38, 1 }
 0x1df   :  { %1180 = vrot.lane.b32.xlu0 %v3755_v52, %s3286_s26 }
 0x1e0   :  { %v3825_v41 = vadd.f32 %v1084_v39, %v1083_v36  ;;  %v3827_v42 = vmax.f32 %v1101_v38, %v1102_v40 }
 0x1e6   :  { %1204 = vrot.lane.b32.xlu1 %v3753_v51, %s3288_s28  ;;  %1220 = vrot.lane.b32.xlu2 %v3753_v51, %s3289_s29 }
 0x1e7   :  { %1188 = vrot.lane.b32.xlu0 %v3753_v51, %s3287_s27 }
 0x1ee   :  { %1244 = vrot.lane.b32.xlu1 %v3755_v52, %s3290_s30  ;;  %1260 = vrot.lane.b32.xlu2 %v3755_v52, %s3291_s8 }
 0x1ef   :  { %1228 = vrot.lane.b32.xlu0 %v3755_v52, %s3289_s29 }
 0x1f6   :  { %1252 = vrot.lane.b32.xlu1 %v3753_v51, %s3291_s8  ;;  %1268 = vrot.lane.b32.xlu2 %v3753_v51, %s3292_s9 }
 0x1f7   :  { %1236 = vrot.lane.b32.xlu0 %v3753_v51, %s3290_s30 }
 0x1fe   :  { %1292 = vrot.lane.b32.xlu1 %v3755_v52, %s3293_s10  ;;  %1308 = vrot.lane.b32.xlu2 %v3755_v52, %s3294_s11 }
 0x1ff   :  { %1276 = vrot.lane.b32.xlu0 %v3755_v52, %s3292_s9 }
 0x206   :  { %1300 = vrot.lane.b32.xlu1 %v3753_v51, %s3294_s11  ;;  %1316 = vrot.lane.b32.xlu2 %v3753_v51, %s3295_s12 }
 0x207   :  { %1284 = vrot.lane.b32.xlu0 %v3753_v51, %s3293_s10 }
 0x20e   :  { %1118 = vrot.lane.b32.xlu1 %v3827_v42, %s3282_s3  ;;  %1126 = vrot.lane.b32.xlu2 %v3825_v41, %s3283_s23 }
 0x20f   :  { %1324 = vrot.lane.b32.xlu0 %v3755_v52, %s3295_s12 }
 0x216   :  { %1134 = vrot.lane.b32.xlu1 %v3827_v42, %s3283_s23  ;;  %1142 = vrot.lane.b32.xlu2 %v3825_v41, %s3284_s24 }
 0x217   :  { %1108 = vrot.lane.b32.xlu0 %v3825_v41, %s3282_s3 }
 0x21e   :  { %1174 = vrot.lane.b32.xlu1 %v3825_v41, %s3286_s26  ;;  %1150 = vrot.lane.b32.xlu2 %v3827_v42, %s3284_s24 }
 0x21f   :  { %1158 = vrot.lane.b32.xlu0 %v3825_v41, %s3285_s25 }
 0x220   :  { %v1125_v43 = vpop.permute.xlu2 %1124 }
 0x226   :  { %1182 = vrot.lane.b32.xlu1 %v3827_v42, %s3286_s26  ;;  %1190 = vrot.lane.b32.xlu2 %v3825_v41, %s3287_s27 }
 0x227   :  { %1166 = vrot.lane.b32.xlu0 %v3827_v42, %s3285_s25 }
 0x228   :  { %v1165_v44 = vpop.permute.xlu2 %1164 }
 0x22e   :  { %1222 = vrot.lane.b32.xlu1 %v3825_v41, %s3289_s29  ;;  %1198 = vrot.lane.b32.xlu2 %v3827_v42, %s3287_s27 }
 0x22f   :  { %1206 = vrot.lane.b32.xlu0 %v3825_v41, %s3288_s28 }
 0x230   :  { %v1173_v45 = vpop.permute.xlu2 %1172 }
 0x236   :  { %1230 = vrot.lane.b32.xlu1 %v3827_v42, %s3289_s29  ;;  %1238 = vrot.lane.b32.xlu2 %v3825_v41, %s3290_s30 }
 0x237   :  { %1214 = vrot.lane.b32.xlu0 %v3827_v42, %s3288_s28 }
 0x238   :  { %v1117_v46 = vpop.permute.xlu1 %1116  ;;  %v1213_v47 = vpop.permute.xlu2 %1212 }
 0x239   :  { %v1107_v48 = vpop.permute.xlu0 %1106  ;;  %v1122_v34 = vmax.f32 %v3755_v52, %v1117_v46 }
 0x23a   :  { %v1112_v49 = vadd.f32 %v1107_v48, %v3753_v51 }
 0x23c   :  { %v1130_v50 = vadd.f32 %v1125_v43, %v1112_v49 }
 0x23e   :  { %1270 = vrot.lane.b32.xlu1 %v3825_v41, %s3292_s9  ;;  %1246 = vrot.lane.b32.xlu2 %v3827_v42, %s3290_s30 }
 0x23f   :  { %1254 = vrot.lane.b32.xlu0 %v3825_v41, %s3291_s8 }
 0x240   :  { %v1149_v26 = vpop.permute.xlu1 %1148  ;;  %v1221_v27 = vpop.permute.xlu2 %1220 }
 0x241   :  { %v1133_v11 = vpop.permute.xlu0 %1132 }
 0x242   :  { %v1138_v29 = vmax.f32 %v1122_v34, %v1133_v11 }
 0x244   :  { %v1154_v37 = vmax.f32 %v1138_v29, %v1149_v26 }
 0x246   :  { %1278 = vrot.lane.b32.xlu1 %v3827_v42, %s3292_s9  ;;  %1286 = vrot.lane.b32.xlu2 %v3825_v41, %s3293_s10  ;;  %v1170_v30 = vmax.f32 %v1154_v37, %v1165_v44 }
 0x247   :  { %1262 = vrot.lane.b32.xlu0 %v3827_v42, %s3291_s8 }
 0x248   :  { %v1157_v55 = vpop.permute.xlu1 %1156  ;;  %v1261_v56 = vpop.permute.xlu2 %1260 }
 0x249   :  { %v1141_v57 = vpop.permute.xlu0 %1140 }
 0x24a   :  { %v1146_v54 = vadd.f32 %v1141_v57, %v1130_v50 }
 0x24c   :  { %v1162_v31 = vadd.f32 %v1157_v55, %v1146_v54 }
 0x24e   :  { %1318 = vrot.lane.b32.xlu1 %v3825_v41, %s3295_s12  ;;  %1294 = vrot.lane.b32.xlu2 %v3827_v42, %s3293_s10  ;;  %v1178_v58 = vadd.f32 %v1173_v45, %v1162_v31 }
 0x24f   :  { %1302 = vrot.lane.b32.xlu0 %v3825_v41, %s3294_s11 }
 0x250   :  { %v1197_v59 = vpop.permute.xlu1 %1196  ;;  %v1269_v61 = vpop.permute.xlu2 %1268 }
 0x251   :  { %v1181_v62 = vpop.permute.xlu0 %1180 }
 0x252   :  { %v1186_v63 = vmax.f32 %v1170_v30, %v1181_v62 }
 0x254   :  { %v1202_v0 = vmax.f32 %v1186_v63, %v1197_v59 }
 0x256   :  { %1326 = vrot.lane.b32.xlu1 %v3827_v42, %s3295_s12  ;;  %1334 = vrot.lane.b32.xlu2 %v3825_v41, %s3296_s13  ;;  %v1218_v53 = vmax.f32 %v1202_v0, %v1213_v47  ;;  %s3297_s12 = smov [#allocation5]  }
 0x257   :  { %1310 = vrot.lane.b32.xlu0 %v3827_v42, %s3294_s11 }
 0x258   :  { %v1205_v1 = vpop.permute.xlu1 %1204  ;;  %v1309_v2 = vpop.permute.xlu2 %1308 }
 0x259   :  { %v1189_v3 = vpop.permute.xlu0 %1188 }
 0x25a   :  { %v1194_v5 = vadd.f32 %v1189_v3, %v1178_v58 }
 0x25c   :  { %v1210_v7 = vadd.f32 %v1205_v1, %v1194_v5 }
 0x25e   :  { %1340 = vrot.lane.b32.xlu1 %v3755_v52, %s3296_s13  ;;  %1342 = vrot.lane.b32.xlu2 %v3827_v42, %s3296_s13  ;;  %v1226_v10 = vadd.f32 %v1221_v27, %v1210_v7 }
 0x25f   :  { %1332 = vrot.lane.b32.xlu0 %v3753_v51, %s3296_s13  ;;  %s2368_s13 = sshll.u32 %s3297_s12, 4  ;;  %s2369_s13 = int_to_ptr.vmem [resolvable:$true] %s2368_s13 }
 0x260   :  { %v1245_v14 = vpop.permute.xlu1 %1244  ;;  %v1317_v6 = vpop.permute.xlu2 %1316 }
 0x261   :  { %v1229_v15 = vpop.permute.xlu0 %1228 }
 0x262   :  { %v1234_v18 = vmax.f32 %v1218_v53, %v1229_v15 }
 0x264   :  { %v1250_v19 = vmax.f32 %v1234_v18, %v1245_v14 }
 0x266   :  { %v1266_v20 = vmax.f32 %v1250_v19, %v1261_v56 }
 0x268   :  { %v1253_v4 = vpop.permute.xlu1 %1252  ;;  %v1127_v22 = vpop.permute.xlu2 %1126 }
 0x269   :  { %v1237_v21 = vpop.permute.xlu0 %1236 }
 0x26a   :  { %v1242_v24 = vadd.f32 %v1237_v21, %v1226_v10  ;;  %v54_v10 = vld [vmem:[%s4381_s1 + $0x10] sm:$0x7]  ;;  %v3080_v21 = vld [vmem:[#allocation2 + $0x18] sm:$0xff] }
 0x26b   :  { %v1369_v14 = vrot.slane %v54_v10, 5 }
 0x26c   :  { %v1258_v33 = vadd.f32 %v1253_v4, %v1242_v24 }
 0x26e   :  { %v1274_v36 = vadd.f32 %v1269_v61, %v1258_v33 }
 0x270   :  { %v1293_v38 = vpop.permute.xlu1 %1292  ;;  %v1143_v40 = vpop.permute.xlu2 %1142 }
 0x271   :  { %v1277_v39 = vpop.permute.xlu0 %1276 }
 0x272   :  { %v1282_v52 = vmax.f32 %v1266_v20, %v1277_v39 }
 0x274   :  { %v1298_v43 = vmax.f32 %v1282_v52, %v1293_v38  ;;  %v3078_v52 = vld [vmem:[#allocation2 + $0x8] sm:$0xff] }
 0x276   :  { %v1314_v44 = vmax.f32 %v1298_v43, %v1309_v2 }
 0x278   :  { %v1301_v45 = vpop.permute.xlu1 %1300  ;;  %v1151_v48 = vpop.permute.xlu2 %1150 }
 0x279   :  { %v1285_v51 = vpop.permute.xlu0 %1284 }
 0x27a   :  { %v1290_v46 = vadd.f32 %v1285_v51, %v1274_v36  ;;  %v3079_v36 = vld [vmem:[#allocation2 + $0x10] sm:$0xff]  ;;  %v3077_v51 = vld [vmem:[#allocation2] sm:$0xff] }
 0x27c   :  { %v1306_v47 = vadd.f32 %v1301_v45, %v1290_v46 }
 0x27e   :  { %v3893_v49 = vadd.f32 %v1317_v6, %v1306_v47 }
 0x280   :  { %v1119_v50 = vpop.permute.xlu1 %1118  ;;  %v1191_v27 = vpop.permute.xlu2 %1190 }
 0x281   :  { %v1325_v34 = vpop.permute.xlu0 %1324  ;;  %v1123_v62 = vmax.f32 %v3827_v42, %v1119_v50 }
 0x282   :  { %v3895_v26 = vmax.f32 %v1314_v44, %v1325_v34 }
 0x288   :  { %v1135_v11 = vpop.permute.xlu1 %1134  ;;  %v1199_v55 = vpop.permute.xlu2 %1198 }
 0x289   :  { %v1109_v29 = vpop.permute.xlu0 %1108  ;;  %v1139_v0 = vmax.f32 %v1123_v62, %v1135_v11 }
 0x28a   :  { %v1113_v54 = vadd.f32 %v1109_v29, %v3825_v41  ;;  %v1368_v41 = vrot.slane %v3625_v60, 5 }
 0x28b   :  { %v1155_v7 = vmax.f32 %v1139_v0, %v1151_v48  ;;  %v3907_v0 = vld [vmem:[%s4381_s1] sm:$0xff] }
 0x28c   :  { %v1131_v58 = vadd.f32 %v1127_v22, %v1113_v54  ;;  %v1370_v15 = vsel %vm1367_vm12, %v1368_v41, %v1369_v14 }
 0x28d   :  { %2721 = vmatpush.msk.msra.mxu1 %vm1375_vm13, %v1370_v15 }
 0x28e   :  { %v1147_v63 = vadd.f32 %v1143_v40, %v1131_v58 }
 0x28f   :  { %1550 = vmatpush.bf16.msrb.mxu1 %v3080_v21  ;;  %v3083_v21 = vld [vmem:[#allocation2 + $0x30] sm:$0xff] }
 0x290   :  { %v1175_v37 = vpop.permute.xlu1 %1174  ;;  %v1239_v31 = vpop.permute.xlu2 %1238 }
 0x291   :  { %v1159_v30 = vpop.permute.xlu0 %1158 }
 0x292   :  { %v1163_v53 = vadd.f32 %v1159_v30, %v1147_v63 }
 0x293   :  { %1551 = vmatpush.bf16.msrb.mxu1 %v3079_v36  ;;  %v3082_v36 = vld [vmem:[#allocation2 + $0x28] sm:$0xff] }
 0x294   :  { %v1179_v5 = vadd.f32 %v1175_v37, %v1163_v53  ;;  %v1512_v53 = vrot.slane %v3907_v0, 4 }
 0x296   :  { %v1195_v42 = vadd.f32 %v1191_v27, %v1179_v5  ;;  %3141 = vpush %v1512_v53 }
 0x297   :  { %1552 = vmatpush.bf16.msrb.mxu1 %v3078_v52 }
 0x298   :  { %v1183_v56 = vpop.permute.xlu1 %1182  ;;  %v1247_v1 = vpop.permute.xlu2 %1246 }
 0x299   :  { %v1167_v57 = vpop.permute.xlu0 %1166 }
 0x29a   :  { %v1171_v6 = vmax.f32 %v1155_v7, %v1167_v57 }
 0x29b   :  { %1553 = vmatpush.bf16.msrb.mxu1 %v3077_v51 }
 0x29c   :  { %v1187_v18 = vmax.f32 %v1171_v6, %v1183_v56 }
 0x29e   :  { %v1203_v33 = vmax.f32 %v1187_v18, %v1199_v55 }
 0x2a0   :  { %v1223_v59 = vpop.permute.xlu1 %1222  ;;  %v1287_v19 = vpop.permute.xlu2 %1286 }
 0x2a1   :  { %v1207_v61 = vpop.permute.xlu0 %1206 }
 0x2a2   :  { %v1211_v20 = vadd.f32 %v1207_v61, %v1195_v42 }
 0x2a4   :  { %v1227_v24 = vadd.f32 %v1223_v59, %v1211_v20  ;;  %v3084_v20 = vld [vmem:[#allocation2 + $0x38] sm:$0xff] }
 0x2a6   :  { %v1243_v60 = vadd.f32 %v1239_v31, %v1227_v24 }
 0x2a8   :  { %v1231_v2 = vpop.permute.xlu1 %1230  ;;  %v1295_v43 = vpop.permute.xlu2 %1294 }
 0x2a9   :  { %v1215_v3 = vpop.permute.xlu0 %1214 }
 0x2aa   :  { %v1219_v38 = vmax.f32 %v1203_v33, %v1215_v3 }
 0x2ac   :  { %v1235_v44 = vmax.f32 %v1219_v38, %v1231_v2  ;;  %v3081_v38 = vld [vmem:[#allocation2 + $0x20] sm:$0xff] }
 0x2ae   :  { %v1251_v47 = vmax.f32 %v1235_v44, %v1247_v1  ;;  %v1399_v1 = vrot.slane %v54_v10, 1 }
 0x2b0   :  { %v1271_v4 = vpop.permute.xlu1 %1270  ;;  %v1335_v11 = vpop.permute.xlu2 %1334  ;;  %2723 = vmatpush.msk.msra.mxu2 %vm1363_vm15, %v1399_v1 }
 0x2b1   :  { %v1255_v22 = vpop.permute.xlu0 %1254 }
 0x2b2   :  { %v1259_v45 = vadd.f32 %v1255_v22, %v1243_v60  ;;  %1691 = vmatpush.bf16.msrb.mxu2 %v3084_v20 }
 0x2b4   :  { %v1275_v46 = vadd.f32 %v1271_v4, %v1259_v45 }
 0x2b6   :  { %v1291_v27 = vadd.f32 %v1287_v19, %v1275_v46  ;;  %1692 = vmatpush.bf16.msrb.mxu2 %v3083_v21 }
 0x2b8   :  { %v1279_v39 = vpop.permute.xlu1 %1278  ;;  %v1343_v59 = vpop.permute.xlu2 %1342 }
 0x2b9   :  { %v1263_v40 = vpop.permute.xlu0 %1262 }
 0x2ba   :  { %v1267_v48 = vmax.f32 %v1251_v47, %v1263_v40  ;;  %1693 = vmatpush.bf16.msrb.mxu2 %v3082_v36 }
 0x2bc   :  { %v1283_v29 = vmax.f32 %v1267_v48, %v1279_v39 }
 0x2be   :  { %v1299_v56 = vmax.f32 %v1283_v29, %v1295_v43  ;;  %1694 = vmatpush.bf16.msrb.mxu2 %v3081_v38 }
 0x2c0   :  { %v1319_v50 = vpop.permute.xlu1 %1318 }
 0x2c1   :  { %v1303_v34 = vpop.permute.xlu0 %1302 }
 0x2c2   :  { %v1307_v37 = vadd.f32 %v1303_v34, %v1291_v27 }
 0x2c4   :  { %v1323_v30 = vadd.f32 %v1319_v50, %v1307_v37 }
 0x2c6   :  { %v1339_v31 = vadd.f32 %v1335_v11, %v1323_v30 }
 0x2c7   :  { %s3142_s17 = spop %3141 }
 0x2c8   :  { %v1327_v55 = vpop.permute.xlu1 %1326  ;;  %v1349_v62 = vmul.f32 0.00390625, %v1339_v31  ;;  %v1514_v4 = vstv %s3142_s17 }
 0x2c9   :  { %v1311_v57 = vpop.permute.xlu0 %1310 }
 0x2ca   :  { %v1315_v54 = vmax.f32 %v1299_v56, %v1311_v57  ;;  %v1352_v14 = vrot.slane %v1349_v62, 7 }
 0x2cc   :  { %v1331_v58 = vmax.f32 %v1315_v54, %v1327_v55 }
 0x2ce   :  { %v1347_v61 = vmax.f32 %v1331_v58, %v1343_v59 }
 0x2d0   :  { %v1341_v63 = vpop.permute.xlu1 %1340  ;;  %v1359_v7 = vrot.slane %v1347_v61, 5  ;;  %v2811_v61 = vld [vmem:[%s4385_s5 + $0x60] sm:$0xf] }
 0x2d1   :  { %v1346_v2 = vmax.f32 %v3895_v26, %v1341_v63  ;;  %v1333_v3 = vpop.permute.xlu0 %1332  ;;  %v1502_v26 = vpack.c.bf16 %v3735_v17, %v3732_v13 }
 0x2d2   :  { %v1338_v5 = vadd.f32 %v1333_v3, %v3893_v49  ;;  %v1503_v49 = vpack.c.bf16 %v3788_v8, %v3795_v9 }
 0x2d3   :  { %v1358_v41 = vrot.slane %v1346_v2, 6 }
 0x2d4   :  { %v1348_v6 = vmul.f32 0.00390625, %v1338_v5 }
 0x2d5   :  { %v1361_v15 = vsel %vm1360_vm2, %v1359_v7, %v1358_v41 }
 0x2d6   :  { %v1354_v42 = vsel %vm1353_vm3, %v1352_v14, %v1348_v6 }
 0x2d7   :  { %v1364_v18 = vsel %vm1363_vm15, %v1354_v42, %v1361_v15 }
 0x2d8   :  { %2722 = vmatmul.msk.f32.vlgmr.msra.gmra.mxu1 %vm1371_vm4, %v1364_v18 }
 0x2e0   :  { %2745 = vmatmul.msk.bf16.vlgmr.msrb.gmra.mxu1 %vm838_vm14, %v1502_v26 }
 0x2f0   :  { %2746 = vmatmul.msk.bf16.gmra.mxu1 %vm838_vm14, %v1503_v49 }
 0x355   :  { %v1395_v10 = vpop.f32.mrf.mxu1 }
 0x356   :  { %v1398_v19 = vmax.f32 %v1395_v10, 0.0 }
 0x358   :  { %2724 = vmatmul.msk.f32.vlgmr.msra.gmra.mxu2 %vm1400_vm5, %v1398_v19 }
 0x35d   :  { %v1555_v22 = vpop.f32.mrf.mxu1 }
 0x35e   :  { %v1556_v24 = vadd.f32 %v1555_v22, %v1514_v4 }
 0x360   :  { %v2747_v33 = vmul.f32 -1.442695, %v1556_v24 }
 0x362   :  { %3197 = vpow2.f32 %v2747_v33 }
 0x365   :  { %v1557_v60 = vpop.f32.mrf.mxu1 }
 0x366   :  { %v1558_v39 = vadd.f32 %v1557_v60, %v1514_v4 }
 0x368   :  { %v3198_v52 = vpop.eup %3197  ;;  %v2748_v40 = vmul.f32 -1.442695, %v1558_v39 }
 0x369   :  { %v1577_v43 = vadd.f32 1.0, %v3198_v52 }
 0x36a   :  { %3199 = vpow2.f32 %v2748_v40 }
 0x36b   :  { %3201 = vrcp.f32 %v1577_v43  ;;  %v1592_v31 = vand.u32 2147483648, %v1577_v43  ;;  %vm1586_vm7 = vweird.f32 %v1577_v43  ;;  %v1590_v58 = vand.u32 2147483647, %v1577_v43 }
 0x36d   :  { %v1560_v44 = vpop.f32.mrf.mxu1  ;;  %v1593_v2 = vor.u32 1.1754944e-38, %v1592_v31  ;;  %vm1591_vm10 = vcmp.eq.f32.partialorder %v1590_v58, 8.507059e+37 }
 0x36e   :  { %v1561_v45 = vadd.f32 %v1560_v44, %v1514_v4 }
 0x370   :  { %v3200_v51 = vpop.eup %3199  ;;  %v2749_v46 = vmul.f32 -1.442695, %v1561_v45 }
 0x371   :  { %v3202_v47 = vpop.eup %3201  ;;  %v1578_v48 = vadd.f32 1.0, %v3200_v51 }
 0x372   :  { %v1582_v50 = vmul.f32 %v3202_v47, %v1577_v43  ;;  %3203 = vpow2.f32 %v2749_v46  ;;  %vm1587_vm6 = vweird.f32 %v3202_v47 }
 0x373   :  { %3205 = vrcp.f32 %v1578_v48  ;;  %vm3919_vm8 = vmor %vm1586_vm7, %vm1587_vm6  ;;  %v1607_v62 = vand.u32 2147483648, %v1578_v48  ;;  %v1605_v53 = vand.u32 2147483647, %v1578_v48  ;;  %vm1601_vm11 = vweird.f32 %v1578_v48 }
 0x374   :  { %v1583_v34 = vsub.f32 1.0, %v1582_v50 }
 0x375   :  { %v1562_v27 = vpop.f32.mrf.mxu1  ;;  %v1608_v41 = vor.u32 1.1754944e-38, %v1607_v62  ;;  %vm1606_vm15 = vcmp.eq.f32.partialorder %v1605_v53, 8.507059e+37  ;;  %v3114_v62 = vld [vmem:[%s4385_s5 + $0x64] sm:$0xf0]  ;;  %v2813_v53 = vld [vmem:[%s4385_s5 + $0x68] sm:$0xf0] }
 0x376   :  { %v1584_v11 = vmul.f32 %v3202_v47, %v1583_v34  ;;  %v1563_v29 = vadd.f32 %v1562_v27, %v1514_v4  ;;  %v1450_v34 = vand.u32 127, %v55_v16  ;;  %v3115_v16 = vld [vmem:[%s4385_s5 + $0x74] sm:$0xf] }
 0x378   :  { %v3204_v37 = vpop.eup %3203  ;;  %v2750_v30 = vmul.f32 -1.442695, %v1563_v29  ;;  %v1585_v57 = vadd.f32 %v3202_v47, %v1584_v11  ;;  %v1455_v27 = vand.u32 3, %v1450_v34 }
 0x379   :  { %v3206_v55 = vpop.eup %3205  ;;  %v1579_v56 = vadd.f32 1.0, %v3204_v37 }
 0x37a   :  { %v1597_v54 = vmul.f32 %v3206_v55, %v1578_v48  ;;  %3207 = vpow2.f32 %v2750_v30  ;;  %vm1602_vm9 = vweird.f32 %v3206_v55  ;;  %v1589_v1 = vsel %vm3919_vm8, %v3202_v47, %v1585_v57  ;;  %v2819_v30 = vld [vmem:[%s4385_s5 + $0x70] sm:$0xf] }
 0x37b   :  { %3209 = vrcp.f32 %v1579_v56  ;;  %vm1603_vm12 = vmor %vm1601_vm11, %vm1602_vm9  ;;  %v1594_v6 = vsel %vm1591_vm10, %v1593_v2, %v1589_v1  ;;  %v1622_v24 = vand.u32 2147483648, %v1579_v56  ;;  %vm1616_vm3 = vweird.f32 %v1579_v56 }
 0x37c   :  { %v1598_v59 = vsub.f32 1.0, %v1597_v54  ;;  %v1641_v49 = vmul.f32 %v1594_v6, %v3732_v13  ;;  %v1620_v36 = vand.u32 2147483647, %v1579_v56  ;;  %vm1463_vm11 = vcmp.eq.s32.totalorder %v1455_v27, %v3416_v25  ;;  %v2839_v27 = vld [vmem:[%s4385_s5 + $0x10] sm:$0xf] }
 0x37d   :  { %v1623_v40 = vor.u32 1.1754944e-38, %v1622_v24  ;;  %v2726_v11 = vsel %vm1463_vm11, 1.0, %v3281_v28  ;;  %v2821_v28 = vld [vmem:[%s4385_s5 + $0x78] sm:$0xf0]  ;;  %v2812_v1 = vor.u32 %v3114_v62, %v2811_v61  ;;  %v3131_v62 = vld [vmem:[%s4385_s5 + $0xb4] sm:$0xf] }
 0x37e   :  { %v1599_v63 = vmul.f32 %v3206_v55, %v1598_v59  ;;  %vm1621_vm7 = vcmp.eq.f32.partialorder %v1620_v36, 8.507059e+37  ;;  %2727 = vmatpush.msk.msrb.mxu3 %vm1375_vm13, %v2726_v11  ;;  %v2824_v54 = vor.u32 %v3115_v16, %v2821_v28  ;;  %v3120_v11 = vld [vmem:[%s4385_s5 + $0x14] sm:$0xf0]  ;;  %v3118_v16 = vld [vmem:[%s4385_s5 + $0x4] sm:$0xf0] }
 0x37f   :  { %v3117_v28 = vld [vmem:[%s4385_s5 + $0x4] sm:$0xf] }
 0x380   :  { %v3208_v3 = vpop.eup %3207  ;;  %v1600_v5 = vadd.f32 %v3206_v55, %v1599_v63  ;;  %1854 = vmatpush.bf16.msrb.mxu0 %v2824_v54  ;;  %v3113_v63 = vld [vmem:[%s4385_s5 + $0x64] sm:$0xf]  ;;  %v2833_v54 = vld [vmem:[%s4385_s5 + $0x8] sm:$0xf0] }
 0x381   :  { %v3210_v7 = vpop.eup %3209  ;;  %v1580_v14 = vadd.f32 1.0, %v3208_v3  ;;  %v2816_v2 = vor.u32 %v3113_v63, %v2813_v53  ;;  %v2803_v3 = vld [vmem:[%s4385_s5 + $0x50] sm:$0xf]  ;;  %v2901_v63 = vld [vmem:[%s4385_s5 + $0xb8] sm:$0xf0] }
 0x382   :  { %v1612_v15 = vmul.f32 %v3210_v7, %v1579_v56  ;;  %v1604_v42 = vsel %vm1603_vm12, %v3206_v55, %v1600_v5  ;;  %vm1617_vm2 = vweird.f32 %v3210_v7  ;;  %v3116_v55 = vld [vmem:[%s4385_s5 + $0x74] sm:$0xf0]  ;;  %v2904_v53 = vor.u32 %v3131_v62, %v2901_v63  ;;  %v3099_v62 = vld [vmem:[%s4384_s4 + $0x34] sm:$0xf]  ;;  %v2919_v63 = vld [vmem:[%s4384_s4 + $0x50] sm:$0xf] }
 0x383   :  { %3211 = vrcp.f32 %v1580_v14  ;;  %v1609_v18 = vsel %vm1606_vm15, %v1608_v41, %v1604_v42  ;;  %vm1618_vm5 = vmor %vm1616_vm3, %vm1617_vm2  ;;  %v1637_v38 = vand.u32 2147483648, %v1580_v14  ;;  %v1635_v52 = vand.u32 2147483647, %v1580_v14  ;;  %v3112_v5 = vld [vmem:[%s4385_s5 + $0x54] sm:$0xf0] }
 0x384   :  { %v1613_v26 = vsub.f32 1.0, %v1612_v15  ;;  %v1642_v10 = vmul.f32 %v1609_v18, %v3735_v17  ;;  %vm1631_vm8 = vweird.f32 %v1580_v14  ;;  %v2820_v56 = vor.u32 %v3116_v55, %v2819_v30  ;;  %1855 = vmatpush.bf16.msrb.mxu0 %v2816_v2  ;;  %v2795_v18 = vld [vmem:[%s4385_s5 + $0x40] sm:$0xf]  ;;  %v2841_v30 = vld [vmem:[%s4385_s5 + $0x18] sm:$0xf0] }
 0x385   :  { %v1638_v45 = vor.u32 1.1754944e-38, %v1637_v38  ;;  %vm1636_vm10 = vcmp.eq.f32.partialorder %v1635_v52, 8.507059e+37  ;;  %v2804_v41 = vor.u32 %v3112_v5, %v2803_v3  ;;  %v3123_v52 = vld [vmem:[%s4385_s5 + $0x34] sm:$0xf]  ;;  %v2891_v2 = vld [vmem:[%s4385_s5 + $0xa0] sm:$0xf] }
 0x386   :  { %v1645_v19 = vpack.c.bf16 %v1642_v10, %v1641_v49  ;;  %v1614_v20 = vmul.f32 %v3210_v7, %v1613_v26  ;;  %1835 = vmatpush.bf16.msra.mxu3 %v2820_v56  ;;  %v3110_v26 = vld [vmem:[%s4385_s5 + $0x44] sm:$0xf0]  ;;  %v2831_v56 = vld [vmem:[%s4385_s5] sm:$0xf]  ;;  %v3129_v5 = vld [vmem:[%s4385_s5 + $0xa4] sm:$0xf] }
 0x387   :  { %v2796_v10 = vor.u32 %v3110_v26, %v2795_v18  ;;  %v3130_v3 = vld [vmem:[%s4385_s5 + $0xa4] sm:$0xf0]  ;;  %v2885_v18 = vld [vmem:[%s4385_s5 + $0x98] sm:$0xf0] }
 0x388   :  { %2767 = vmatmul.msk.bf16.vlgmr.msrb.gmra.mxu2 %vm838_vm14, %v1645_v19  ;;  %v1615_v22 = vadd.f32 %v3210_v7, %v1614_v20  ;;  %v3109_v19 = vld [vmem:[%s4385_s5 + $0x44] sm:$0xf]  ;;  %v2797_v20 = vld [vmem:[%s4385_s5 + $0x48] sm:$0xf0] }
 0x389   :  { %v3212_v4 = vpop.eup %3211 }
 0x38a   :  { %v1627_v21 = vmul.f32 %v3212_v4, %v1580_v14  ;;  %v1619_v60 = vsel %vm1618_vm5, %v3210_v7, %v1615_v22  ;;  %vm1632_vm6 = vweird.f32 %v3212_v4  ;;  %v3111_v7 = vld [vmem:[%s4385_s5 + $0x54] sm:$0xf]  ;;  %1836 = vmatpush.bf16.msra.mxu3 %v2812_v1  ;;  %v2805_v14 = vld [vmem:[%s4385_s5 + $0x58] sm:$0xf0]  ;;  %v2800_v22 = vor.u32 %v3109_v19, %v2797_v20  ;;  %v3126_v19 = vld [vmem:[%s4385_s5 + $0x84] sm:$0xf0] }
 0x38b   :  { %v1624_v44 = vsel %vm1621_vm7, %v1623_v40, %v1619_v60  ;;  %vm1633_vm9 = vmor %vm1631_vm8, %vm1632_vm6  ;;  %v2808_v6 = vor.u32 %v3111_v7, %v2805_v14  ;;  %v2855_v60 = vld [vmem:[%s4385_s5 + $0x30] sm:$0xf]  ;;  %v2892_v7 = vor.u32 %v3130_v3, %v2891_v2  ;;  %v1656_v20 = vperm.slane %v3907_v0, 2  ;;  %v2973_v2 = vld [vmem:[%s4384_s4 + $0x38] sm:$0xf0] }
 0x38c   :  { %v1628_v33 = vsub.f32 1.0, %v1627_v21  ;;  %v1643_v47 = vmul.f32 %v1624_v44, %v3795_v9  ;;  %v2857_v44 = vld [vmem:[%s4385_s5 + $0x38] sm:$0xf0]  ;;  %v2883_v14 = vld [vmem:[%s4385_s5 + $0x90] sm:$0xf]  ;;  %v2976_v3 = vor.u32 %v3099_v62, %v2973_v2 }
 0x38d   :  { %1856 = vmatpush.bf16.msrb.mxu0 %v2808_v6  ;;  %v3128_v6 = vld [vmem:[%s4385_s5 + $0x94] sm:$0xf0]  ;;  %v2999_v62 = vld [vmem:[%s4384_s4 + $0xa0] sm:$0xf]  ;;  %v3103_v2 = vld [vmem:[%s4384_s4 + $0x94] sm:$0xf] }
 0x38e   :  { %v1629_v39 = vmul.f32 %v3212_v4, %v1628_v33  ;;  %1837 = vmatpush.bf16.msra.mxu3 %v2804_v41  ;;  %v2893_v41 = vld [vmem:[%s4385_s5 + $0xa8] sm:$0xf0]  ;;  %v2884_v26 = vor.u32 %v3128_v6, %v2883_v14  ;;  %v3085_v6 = vld [vmem:[%s4384_s4 + $0x44] sm:$0xf] }
 0x390   :  { %v1630_v43 = vadd.f32 %v3212_v4, %v1629_v39  ;;  %v3124_v39 = vld [vmem:[%s4385_s5 + $0x34] sm:$0xf0] }
 0x391   :  { %1857 = vmatpush.bf16.msrb.mxu0 %v2800_v22 }
 0x392   :  { %v1634_v51 = vsel %vm1633_vm9, %v3212_v4, %v1630_v43  ;;  %1838 = vmatpush.bf16.msra.mxu3 %v2796_v10  ;;  %v2856_v43 = vor.u32 %v3124_v39, %v2855_v60  ;;  %v2875_v10 = vld [vmem:[%s4385_s5 + $0x80] sm:$0xf] }
 0x393   :  { %v1639_v46 = vsel %vm1636_vm10, %v1638_v45, %v1634_v51  ;;  %v2860_v45 = vor.u32 %v3123_v52, %v2857_v44  ;;  %v2847_v51 = vld [vmem:[%s4385_s5 + $0x20] sm:$0xf]  ;;  %v2876_v22 = vor.u32 %v3126_v19, %v2875_v10 }
 0x394   :  { %v1644_v48 = vmul.f32 %v1639_v46, %v3788_v8  ;;  %1927 = vmatpush.bf16.msra.mxu1 %v2856_v43  ;;  %v3122_v46 = vld [vmem:[%s4385_s5 + $0x24] sm:$0xf0] }
 0x395   :  { %1946 = vmatpush.bf16.msra.mxu2 %v2860_v45  ;;  %2039 = vmatpush.bf16.msra.mxu0 %v2904_v53  ;;  %v3088_v53 = vld [vmem:[%s4384_s4 + $0x54] sm:$0xf0] }
 0x396   :  { %v1646_v50 = vpack.c.bf16 %v1644_v48, %v1643_v47  ;;  %v3121_v47 = vld [vmem:[%s4385_s5 + $0x24] sm:$0xf]  ;;  %v2848_v48 = vor.u32 %v3122_v46, %v2847_v51 }
 0x398   :  { %2768 = vmatmul.msk.bf16.gmra.mxu2 %vm838_vm14, %v1646_v50  ;;  %v2849_v50 = vld [vmem:[%s4385_s5 + $0x28] sm:$0xf0]  ;;  %1928 = vmatpush.bf16.msra.mxu1 %v2848_v48 }
 0x399   :  { %v2852_v34 = vor.u32 %v3121_v47, %v2849_v50  ;;  %v3091_v50 = vld [vmem:[%s4384_s4 + $0x74] sm:$0xf] }
 0x39b   :  { %1947 = vmatpush.bf16.msra.mxu2 %v2852_v34  ;;  %v2937_v34 = vld [vmem:[%s4384_s4 + $0x78] sm:$0xf0] }
 0x3db   :  { %v1423_v29 = vpop.f32.mrf.mxu2 }
 0x3dc   :  { %v1427_v37 = vrot.slane %v1423_v29, 2 }
 0x3de   :  { %v1429_v57 = vadd.f32 %v1427_v37, %v1423_v29  ;;  %v3119_v29 = vld [vmem:[%s4385_s5 + $0x14] sm:$0xf]  ;;  %v2840_v37 = vor.u32 %v3120_v11, %v2839_v27  ;;  %v2935_v27 = vld [vmem:[%s4384_s4 + $0x70] sm:$0xf] }
 0x3df   :  { %v2844_v55 = vor.u32 %v3119_v29, %v2841_v30  ;;  %v2940_v29 = vor.u32 %v3091_v50, %v2937_v34  ;;  %v3089_v30 = vld [vmem:[%s4384_s4 + $0x64] sm:$0xf]  ;;  %v2957_v34 = vld [vmem:[%s4384_s4 + $0x18] sm:$0xf0] }
 0x3e0   :  { %v2725_v31 = vmul.f32 -1.442695, %v1429_v57  ;;  %1929 = vmatpush.bf16.msra.mxu1 %v2840_v37  ;;  %v2832_v57 = vor.u32 %v3118_v16, %v2831_v56  ;;  %v3092_v37 = vld [vmem:[%s4384_s4 + $0x74] sm:$0xf0]  ;;  %v2927_v16 = vld [vmem:[%s4384_s4 + $0x60] sm:$0xf] }
 0x3e1   :  { %1948 = vmatpush.bf16.msra.mxu2 %v2844_v55  ;;  %v2929_v55 = vld [vmem:[%s4384_s4 + $0x68] sm:$0xf0]  ;;  %v2936_v56 = vor.u32 %v3092_v37, %v2935_v27  ;;  %v3093_v37 = vld [vmem:[%s4384_s4 + $0x4] sm:$0xf] }
 0x3e2   :  { %3213 = vpow2.f32 %v2725_v31  ;;  %v2899_v31 = vld [vmem:[%s4385_s5 + $0xb0] sm:$0xf] }
 0x3e4   :  { %1930 = vmatpush.bf16.msra.mxu1 %v2832_v57  ;;  %v3087_v57 = vld [vmem:[%s4384_s4 + $0x54] sm:$0xf] }
 0x3e8   :  { %v3214_v58 = vpop.eup %3213  ;;  %2104 = vmatpush.bf16.msrb.mxu1 %v2936_v56  ;;  %v3107_v56 = vld [vmem:[%s4384_s4 + $0xb4] sm:$0xf] }
 0x3e9   :  { %v1433_v59 = vadd.f32 1.0, %v3214_v58  ;;  %v3132_v58 = vld [vmem:[%s4385_s5 + $0xb4] sm:$0xf0] }
 0x3ea   :  { %v2900_v61 = vor.u32 %v3132_v58, %v2899_v31  ;;  %v2932_v31 = vor.u32 %v3089_v30, %v2929_v55  ;;  %v2949_v55 = vld [vmem:[%s4384_s4 + $0x8] sm:$0xf0] }
 0x3eb   :  { %3215 = vrcp.f32 %v1433_v59  ;;  %v1443_v4 = vand.u32 2147483647, %v1433_v59  ;;  %v1445_v21 = vand.u32 2147483648, %v1433_v59  ;;  %vm1439_vm12 = vweird.f32 %v1433_v59 }
 0x3ed   :  { %vm1444_vm2 = vcmp.eq.f32.partialorder %v1443_v4, 8.507059e+37  ;;  %v1446_v36 = vor.u32 1.1754944e-38, %v1445_v21  ;;  %v3125_v4 = vld [vmem:[%s4385_s5 + $0x84] sm:$0xf]  ;;  %v2877_v21 = vld [vmem:[%s4385_s5 + $0x88] sm:$0xf0] }
 0x3f1   :  { %v3216_v15 = vpop.eup %3215 }
 0x3f2   :  { %v1435_v42 = vmul.f32 %v3216_v15, %v1433_v59  ;;  %vm1440_vm13 = vweird.f32 %v3216_v15  ;;  %v2836_v59 = vor.u32 %v3117_v28, %v2833_v54  ;;  %v3090_v28 = vld [vmem:[%s4384_s4 + $0x64] sm:$0xf0]  ;;  %v2921_v54 = vld [vmem:[%s4384_s4 + $0x58] sm:$0xf0] }
 0x3f3   :  { %vm1441_vm15 = vmor %vm1439_vm12, %vm1440_vm13  ;;  %v2928_v58 = vor.u32 %v3090_v28, %v2927_v16  ;;  %v3009_v16 = vld [vmem:[%s4384_s4 + $0xb8] sm:$0xf0]  ;;  %v2952_v28 = vor.u32 %v3093_v37, %v2949_v55 }
 0x3f4   :  { %v1436_v49 = vsub.f32 1.0, %v1435_v42  ;;  %1949 = vmatpush.bf16.msra.mxu2 %v2836_v59  ;;  %v3127_v42 = vld [vmem:[%s4385_s5 + $0x94] sm:$0xf]  ;;  %v2971_v59 = vld [vmem:[%s4384_s4 + $0x30] sm:$0xf] }
 0x3f5   :  { %2105 = vmatpush.bf16.msrb.mxu1 %v2928_v58  ;;  %v3105_v58 = vld [vmem:[%s4384_s4 + $0xa4] sm:$0xf] }
 0x3f6   :  { %v1437_v24 = vmul.f32 %v3216_v15, %v1436_v49  ;;  %v2888_v49 = vor.u32 %v3127_v42, %v2885_v18 }
 0x3f8   :  { %v1438_v33 = vadd.f32 %v3216_v15, %v1437_v24  ;;  %2123 = vmatpush.bf16.msrb.mxu2 %v2940_v29  ;;  %v3094_v29 = vld [vmem:[%s4384_s4 + $0x4] sm:$0xf0] }
 0x3fa   :  { %v1442_v38 = vsel %vm1441_vm15, %v3216_v15, %v1438_v33  ;;  %v2896_v15 = vor.u32 %v3129_v5, %v2893_v41  ;;  %v2880_v33 = vor.u32 %v3125_v4, %v2877_v21  ;;  %v2920_v41 = vor.u32 %v3088_v53, %v2919_v63  ;;  %v3106_v63 = vld [vmem:[%s4384_s4 + $0xa4] sm:$0xf0] }
 0x3fb   :  { %v1447_v40 = vsel %vm1444_vm2, %v1446_v36, %v1442_v38 }
 0x3fc   :  { %2728 = vmatmul.msk.f32.vlgmr.msrb.gmra.mxu3 %vm1371_vm4, %v1447_v40  ;;  %2040 = vmatpush.bf16.msra.mxu0 %v2896_v15  ;;  %v2913_v15 = vld [vmem:[%s4384_s4 + $0x48] sm:$0xf0] }
 0x3fd   :  { %2020 = vmatpush.bf16.msrb.mxu3 %v2900_v61  ;;  %v3100_v61 = vld [vmem:[%s4384_s4 + $0x34] sm:$0xf0]  ;;  %2124 = vmatpush.bf16.msrb.mxu2 %v2932_v31  ;;  %v2916_v10 = vor.u32 %v3085_v6, %v2913_v15  ;;  %v3101_v6 = vld [vmem:[%s4384_s4 + $0x84] sm:$0xf]  ;;  %v2985_v15 = vld [vmem:[%s4384_s4 + $0x88] sm:$0xf0] }
 0x3fe   :  { %2106 = vmatpush.bf16.msrb.mxu1 %v2920_v41  ;;  %v3108_v31 = vld [vmem:[%s4384_s4 + $0xb4] sm:$0xf0] }
 0x3ff   :  { %v3104_v41 = vld [vmem:[%s4384_s4 + $0x94] sm:$0xf0] }
 0x400   :  { %2041 = vmatpush.bf16.msra.mxu0 %v2888_v49 }
 0x401   :  { %2021 = vmatpush.bf16.msrb.mxu3 %v2892_v7  ;;  %v2924_v7 = vor.u32 %v3087_v57, %v2921_v54  ;;  %v3012_v57 = vor.u32 %v3107_v56, %v3009_v16  ;;  %v3007_v54 = vld [vmem:[%s4384_s4 + $0xb0] sm:$0xf] }
 0x403   :  { %2125 = vmatpush.bf16.msrb.mxu2 %v2924_v7  ;;  %v2991_v7 = vld [vmem:[%s4384_s4 + $0x90] sm:$0xf] }
 0x404   :  { %2042 = vmatpush.bf16.msra.mxu0 %v2880_v33 }
 0x405   :  { %2022 = vmatpush.bf16.msrb.mxu3 %v2884_v26 }
 0x407   :  { %2126 = vmatpush.bf16.msrb.mxu2 %v2916_v10  ;;  %v2983_v10 = vld [vmem:[%s4384_s4 + $0x80] sm:$0xf] }
 0x409   :  { %2023 = vmatpush.bf16.msrb.mxu3 %v2876_v22 }
 0x40b   :  { %v1696_v1 = vpop.f32.mrf.mxu2 }
 0x40c   :  { %v4081_v36 = vadd.f32 %v1696_v1, %v1656_v20  ;;  %v2972_v1 = vor.u32 %v3100_v61, %v2971_v59  ;;  %v3008_v59 = vor.u32 %v3108_v31, %v3007_v54  ;;  %v3001_v61 = vld [vmem:[%s4384_s4 + $0xa8] sm:$0xf0] }
 0x40d   :  { %v3004_v53 = vor.u32 %v3105_v58, %v3001_v61 }
 0x40e   :  { %v1756_v45 = vrot.slane %v4081_v36, 7  ;;  %v1766_v42 = vrot.slane %v4081_v36, 1 }
 0x413   :  { %v1698_v24 = vpop.f32.mrf.mxu2 }
 0x414   :  { %v4083_v38 = vadd.f32 %v1698_v24, %v1656_v20 }
 0x416   :  { %v1754_v60 = vpack.c.bf16 %v4083_v38, %v4081_v36  ;;  %v1757_v40 = vrot.slane %v4083_v38, 7  ;;  %v1767_v14 = vrot.slane %v4083_v38, 1  ;;  %v2963_v38 = vld [vmem:[%s4384_s4 + $0x20] sm:$0xf] }
 0x418   :  { %2825 = vmatmul.msk.bf16.vlgmr.msra.gmra.mxu3 %vm838_vm14, %v1754_v60  ;;  %2827 = vmatmul.msk.bf16.vlgmr.msrb.gmra.mxu0 %vm838_vm14, %v1754_v60  ;;  %v1762_v47 = vsel %vm144_vm0, %v1756_v45, %v1757_v40  ;;  %v1772_v49 = vsel %vm165_vm1, %v1766_v42, %v1767_v14  ;;  %v3098_v60 = vld [vmem:[%s4384_s4 + $0x24] sm:$0xf0] }
 0x419   :  { %2188 = vmatpush.bf16.msra.mxu3 %v2972_v1  ;;  %2207 = vmatpush.bf16.msrb.mxu0 %v2976_v3  ;;  %v3000_v1 = vor.u32 %v3106_v63, %v2999_v62  ;;  %v2993_v3 = vld [vmem:[%s4384_s4 + $0x98] sm:$0xf0] }
 0x41b   :  { %v1701_v39 = vpop.f32.mrf.mxu2 }
 0x41c   :  { %v4090_v43 = vadd.f32 %v1701_v39, %v1656_v20  ;;  %v3097_v39 = vld [vmem:[%s4384_s4 + $0x24] sm:$0xf] }
 0x41e   :  { %v1768_v5 = vrot.slane %v4090_v43, 1  ;;  %v1758_v26 = vrot.slane %v4090_v43, 7 }
 0x420   :  { %v1771_v18 = vsel %vm165_vm1, %v1767_v14, %v1768_v5  ;;  %v1761_v4 = vsel %vm144_vm0, %v1757_v40, %v1758_v26  ;;  %v2965_v40 = vld [vmem:[%s4384_s4 + $0x28] sm:$0xf0]  ;;  %v2992_v14 = vor.u32 %v3104_v41, %v2991_v7 }
 0x421   :  { %v1774_v19 = vpack.c.bf16 %v1771_v18, %v1772_v49 }
 0x423   :  { %v1703_v52 = vpop.f32.mrf.mxu2 }
 0x424   :  { %v4092_v44 = vadd.f32 %v1703_v52, %v1656_v20  ;;  %v2964_v52 = vor.u32 %v3098_v60, %v2963_v38 }
 0x426   :  { %v1759_v51 = vrot.slane %v4092_v44, 7  ;;  %v1755_v46 = vpack.c.bf16 %v4092_v44, %v4090_v43  ;;  %v1769_v22 = vrot.slane %v4092_v44, 1  ;;  %v2968_v43 = vor.u32 %v3097_v39, %v2965_v40  ;;  %2189 = vmatpush.bf16.msra.mxu3 %v2964_v52  ;;  %v2911_v44 = vld [vmem:[%s4384_s4 + $0x40] sm:$0xf] }
 0x428   :  { %v1763_v48 = vsel %vm144_vm0, %v1759_v51, %v1756_v45  ;;  %2826 = vmatmul.msk.bf16.gmra.mxu3 %vm838_vm14, %v1755_v46  ;;  %2828 = vmatmul.msk.bf16.gmra.mxu0 %vm838_vm14, %v1755_v46  ;;  %v1760_v20 = vsel %vm144_vm0, %v1758_v26, %v1759_v51  ;;  %v1770_v24 = vsel %vm165_vm1, %v1768_v5, %v1769_v22  ;;  %v3086_v45 = vld [vmem:[%s4384_s4 + $0x44] sm:$0xf0]  ;;  %v2955_v46 = vld [vmem:[%s4384_s4 + $0x10] sm:$0xf] }
 0x429   :  { %v1764_v11 = vpack.c.bf16 %v1762_v47, %v1763_v48  ;;  %v1765_v21 = vpack.c.bf16 %v1760_v20, %v1761_v4  ;;  %v1773_v33 = vsel %vm165_vm1, %v1769_v22, %v1766_v42  ;;  %2208 = vmatpush.bf16.msrb.mxu0 %v2968_v43  ;;  %v2912_v51 = vor.u32 %v3086_v45, %v2911_v44  ;;  %v3096_v47 = vld [vmem:[%s4384_s4 + $0x14] sm:$0xf0]  ;;  %v3095_v48 = vld [vmem:[%s4384_s4 + $0x14] sm:$0xf] }
 0x42a   :  { %v1775_v36 = vpack.c.bf16 %v1773_v33, %v1770_v24  ;;  %v2956_v50 = vor.u32 %v3096_v47, %v2955_v46  ;;  %v2960_v27 = vor.u32 %v3095_v48, %v2957_v34  ;;  %v2996_v5 = vor.u32 %v3103_v2, %v2993_v3 }
 0x42b   :  { %2861 = vmatmul.msk.bf16.vlgmr.msra.gmra.mxu1 %vm838_vm14, %v1764_v11  ;;  %2863 = vmatmul.msk.bf16.vlgmr.msra.gmra.mxu2 %vm838_vm14, %v1764_v11  ;;  %v2947_v11 = vld [vmem:[%s4384_s4] sm:$0xf]  ;;  %v2988_v42 = vor.u32 %v3101_v6, %v2985_v15 }
 0x42c   :  { %2107 = vmatpush.bf16.msrb.mxu1 %v2912_v51  ;;  %2190 = vmatpush.bf16.msra.mxu3 %v2956_v50  ;;  %v2948_v30 = vor.u32 %v3094_v29, %v2947_v11 }
 0x42d   :  { %2209 = vmatpush.bf16.msrb.mxu0 %v2960_v27  ;;  %2291 = vmatpush.bf16.msra.mxu2 %v3012_v57 }
 0x430   :  { %2191 = vmatpush.bf16.msra.mxu3 %v2948_v30  ;;  %2272 = vmatpush.bf16.msra.mxu1 %v3008_v59 }
 0x431   :  { %2210 = vmatpush.bf16.msrb.mxu0 %v2952_v28  ;;  %2292 = vmatpush.bf16.msra.mxu2 %v3004_v53 }
 0x434   :  { %2273 = vmatpush.bf16.msra.mxu1 %v3000_v1 }
 0x435   :  { %2293 = vmatpush.bf16.msra.mxu2 %v2996_v5 }
 0x438   :  { %2905 = vmatmul.msk.bf16.vlgmr.msrb.gmra.mxu3 %vm838_vm14, %v1774_v19  ;;  %2907 = vmatmul.msk.bf16.vlgmr.msra.gmra.mxu0 %vm838_vm14, %v1774_v19  ;;  %v3102_v19 = vld [vmem:[%s4384_s4 + $0x84] sm:$0xf0] }
 0x439   :  { %2274 = vmatpush.bf16.msra.mxu1 %v2992_v14  ;;  %2294 = vmatpush.bf16.msra.mxu2 %v2988_v42  ;;  %v2984_v22 = vor.u32 %v3102_v19, %v2983_v10 }
 0x43b   :  { %2862 = vmatmul.msk.bf16.gmra.mxu1 %vm838_vm14, %v1765_v21  ;;  %2864 = vmatmul.msk.bf16.gmra.mxu2 %vm838_vm14, %v1765_v21 }
 0x43d   :  { %2275 = vmatpush.bf16.msra.mxu1 %v2984_v22 }
 0x448   :  { %2906 = vmatmul.msk.bf16.gmra.mxu3 %vm838_vm14, %v1775_v36  ;;  %2908 = vmatmul.msk.bf16.gmra.mxu0 %vm838_vm14, %v1775_v36 }
 0x47f   :  { %v1489_v18 = vpop.f32.mrf.mxu3 }
 0x480   :  { %v1493_v26 = vrot.slane %v1489_v18, 1  ;;  %v1494_v49 = vperm.slane %v1489_v18, 0 }
 0x482   :  { %v1495_v20 = vperm.slane %v1493_v26, 0  ;;  %v1498_v4 = vmul.f32 %v1494_v49, %v3732_v13  ;;  %v1499_v21 = vmul.f32 %v1494_v49, %v3735_v17 }
 0x484   :  { %v1501_v24 = vmul.f32 %v1495_v20, %v3788_v8  ;;  %v1706_v33 = vpack.c.bf16 %v1499_v21, %v1498_v4  ;;  %v1708_v36 = vrot.slane %v1498_v4, 7  ;;  %v1709_v38 = vrot.slane %v1499_v21, 7 }
 0x485   :  { %v1500_v17 = vmul.f32 %v1495_v20, %v3795_v9  ;;  %v1718_v46 = vrot.slane %v1498_v4, 1  ;;  %v1719_v9 = vrot.slane %v1499_v21, 1 }
 0x486   :  { %v1711_v60 = vrot.slane %v1501_v24, 7  ;;  %2941 = vmatmul.msk.bf16.vlgmr.msrb.gmra.mxu1 %vm838_vm14, %v1706_v33  ;;  %2943 = vmatmul.msk.bf16.vlgmr.msrb.gmra.mxu2 %vm838_vm14, %v1706_v33  ;;  %v1714_v39 = vsel %vm144_vm0, %v1708_v36, %v1709_v38  ;;  %v1721_v34 = vrot.slane %v1501_v24, 1 }
 0x487   :  { %v1710_v8 = vrot.slane %v1500_v17, 7  ;;  %v1707_v40 = vpack.c.bf16 %v1501_v24, %v1500_v17  ;;  %v1720_v51 = vrot.slane %v1500_v17, 1  ;;  %v1724_v48 = vsel %vm165_vm1, %v1718_v46, %v1719_v9 }
 0x488   :  { %v1715_v13 = vsel %vm144_vm0, %v1711_v60, %v1708_v36  ;;  %v1725_v11 = vsel %vm165_vm1, %v1721_v34, %v1718_v46 }
 0x489   :  { %v1716_v52 = vpack.c.bf16 %v1714_v39, %v1715_v13  ;;  %v1712_v43 = vsel %vm144_vm0, %v1710_v8, %v1711_v60  ;;  %v1713_v44 = vsel %vm144_vm0, %v1709_v38, %v1710_v8  ;;  %v1723_v47 = vsel %vm165_vm1, %v1719_v9, %v1720_v51 }
 0x48a   :  { %v1717_v45 = vpack.c.bf16 %v1712_v43, %v1713_v44  ;;  %v1726_v50 = vpack.c.bf16 %v1723_v47, %v1724_v48  ;;  %v1722_v27 = vsel %vm165_vm1, %v1720_v51, %v1721_v34  ;;  %v4327_v34 = vperm.slane %v3907_v0, 3  ;;  %v3218_v0 = vld [vmem:[%s4380_s0] sm:$0xff] }
 0x48b   :  { %2977 = vmatmul.msk.bf16.vlgmr.msra.gmra.mxu3 %vm838_vm14, %v1716_v52  ;;  %2979 = vmatmul.msk.bf16.vlgmr.msrb.gmra.mxu0 %vm838_vm14, %v1716_v52  ;;  %v1727_v29 = vpack.c.bf16 %v1725_v11, %v1722_v27 }
 0x495   :  { %v1859_v37 = vpop.f32.mrf.mxu0 }
 0x496   :  { %2942 = vmatmul.msk.bf16.gmra.mxu1 %vm838_vm14, %v1707_v40  ;;  %2944 = vmatmul.msk.bf16.gmra.mxu2 %vm838_vm14, %v1707_v40 }
 0x49b   :  { %2978 = vmatmul.msk.bf16.gmra.mxu3 %vm838_vm14, %v1717_v45  ;;  %2980 = vmatmul.msk.bf16.gmra.mxu0 %vm838_vm14, %v1717_v45  ;;  %v1840_v30 = vpop.f32.mrf.mxu3 }
 0x49d   :  { %v1861_v55 = vpop.f32.mrf.mxu0 }
 0x4a3   :  { %v1842_v56 = vpop.f32.mrf.mxu3 }
 0x4a5   :  { %v4305_v16 = vpop.f32.mrf.mxu0 }
 0x4a6   :  { %3013 = vmatmul.msk.bf16.vlgmr.msra.gmra.mxu1 %vm838_vm14, %v1726_v50  ;;  %3015 = vmatmul.msk.bf16.vlgmr.msra.gmra.mxu2 %vm838_vm14, %v1726_v50 }
 0x4a8   :  { %v1932_v54 = vpop.f32.mrf.mxu1 }
 0x4ab   :  { %v4307_v28 = vpop.f32.mrf.mxu3 }
 0x4ad   :  { %v1866_v57 = vpop.f32.mrf.mxu0 }
 0x4ae   :  { %v1951_v59 = vpop.f32.mrf.mxu2 }
 0x4b0   :  { %v1934_v25 = vpop.f32.mrf.mxu1 }
 0x4b3   :  { %v1847_v31 = vpop.f32.mrf.mxu3 }
 0x4b5   :  { %v2044_v58 = vpop.f32.mrf.mxu0 }
 0x4b6   :  { %3014 = vmatmul.msk.bf16.gmra.mxu1 %vm838_vm14, %v1727_v29  ;;  %3016 = vmatmul.msk.bf16.gmra.mxu2 %vm838_vm14, %v1727_v29  ;;  %v1953_v63 = vpop.f32.mrf.mxu2 }
 0x4b8   :  { %v1937_v53 = vpop.f32.mrf.mxu1 }
 0x4bb   :  { %v2025_v61 = vpop.f32.mrf.mxu3 }
 0x4bd   :  { %v4309_v62 = vpop.f32.mrf.mxu0 }
 0x4be   :  { %v4313_v3 = vpop.f32.mrf.mxu2 }
 0x4c0   :  { %v1939_v5 = vpop.f32.mrf.mxu1 }
 0x4c3   :  { %v2027_v1 = vpop.f32.mrf.mxu3 }
 0x4c5   :  { %v4311_v2 = vpop.f32.mrf.mxu0 }
 0x4c6   :  { %v1958_v14 = vpop.f32.mrf.mxu2 }
 0x4cb   :  { %v4315_v7 = vpop.f32.mrf.mxu3 }
 0x4cd   :  { %v4317_v41 = vpop.f32.mrf.mxu0 }
 0x4d3   :  { %v4319_v15 = vpop.f32.mrf.mxu3 }
 0x503   :  { %v2109_v6 = vpop.f32.mrf.mxu1 }
 0x504   :  { %v2110_v45 = vadd.f32 %v2109_v6, %v1840_v30  ;;  %v53_v30 = vld [vmem:[%s4381_s1 + $0x8] sm:$0xff] }
 0x508   :  { %v2212_v42 = vpop.f32.mrf.mxu0 }
 0x509   :  { %v2128_v18 = vpop.f32.mrf.mxu2  ;;  %v2213_v51 = vadd.f32 %v2212_v42, %v1951_v59 }
 0x50a   :  { %v2129_v11 = vadd.f32 %v2128_v18, %v1859_v37  ;;  %v2339_v37 = vperm.slane %v53_v30, 3 }
 0x50b   :  { %v2111_v26 = vpop.f32.mrf.mxu1  ;;  %v2307_v27 = vmul.f32 %v3618_v32, %v2213_v51 }
 0x50c   :  { %v2112_v33 = vadd.f32 %v2111_v26, %v1842_v56 }
 0x50e   :  { %v2193_v49 = vpop.f32.mrf.mxu3 }
 0x50f   :  { %v2194_v52 = vadd.f32 %v2193_v49, %v1932_v54  ;;  %v3219_v49 = vld [vmem:[%s4380_s0 + $0x8] sm:$0xff] }
 0x510   :  { %v2214_v10 = vpop.f32.mrf.mxu0 }
 0x511   :  { %v2215_v19 = vadd.f32 %v2214_v10, %v1953_v63  ;;  %v2130_v20 = vpop.f32.mrf.mxu2  ;;  %v2306_v8 = vmul.f32 %v3618_v32, %v2194_v52 }
 0x512   :  { %v2131_v4 = vadd.f32 %v2130_v20, %v1861_v55 }
 0x513   :  { %v2114_v21 = vpop.f32.mrf.mxu1  ;;  %v2314_v50 = vadd.f32 %v2306_v8, %v2110_v45 }
 0x514   :  { %v4321_v22 = vadd.f32 %v2215_v19, %v2131_v4 }
 0x516   :  { %v2195_v24 = vpop.f32.mrf.mxu3 }
 0x517   :  { %v2196_v36 = vadd.f32 %v2195_v24, %v1934_v25 }
 0x518   :  { %v2217_v38 = vpop.f32.mrf.mxu0 }
 0x519   :  { %v2316_v60 = vadd.f32 %v2196_v36, %v2112_v33  ;;  %v2133_v39 = vpop.f32.mrf.mxu2  ;;  %v2218_v4 = vadd.f32 %v2217_v38, %v4313_v3  ;;  %v3220_v33 = vld [vmem:[%s4380_s0 + $0x10] sm:$0xff] }
 0x51a   :  { %v2134_v3 = vadd.f32 %v2133_v39, %v4305_v16 }
 0x51b   :  { %v2116_v13 = vpop.f32.mrf.mxu1 }
 0x51c   :  { %v2117_v56 = vadd.f32 %v2116_v13, %v1847_v31 }
 0x51e   :  { %v2198_v17 = vpop.f32.mrf.mxu3 }
 0x51f   :  { %v2199_v6 = vadd.f32 %v2198_v17, %v1937_v53 }
 0x520   :  { %v2219_v40 = vpop.f32.mrf.mxu0 }
 0x521   :  { %v2220_v43 = vadd.f32 %v2219_v40, %v1958_v14  ;;  %v2135_v44 = vpop.f32.mrf.mxu2  ;;  %v2310_v26 = vmul.f32 %v3649_v23, %v2199_v6 }
 0x522   :  { %v2136_v46 = vadd.f32 %v2135_v44, %v1866_v57 }
 0x523   :  { %v2277_v9 = vpop.f32.mrf.mxu1 }
 0x524   :  { %v4324_v47 = vadd.f32 %v2220_v43, %v2136_v46  ;;  %v2278_v48 = vadd.f32 %v2277_v9, %v2025_v61  ;;  %v2315_v61 = vadd.f32 %v2307_v27, %v2129_v11  ;;  %v3223_v46 = vld [vmem:[%s4380_s0 + $0x28] sm:$0xff] }
 0x526   :  { %v2330_v29 = vadd.f32 %v2314_v50, %v2278_v48  ;;  %v2200_v55 = vpop.f32.mrf.mxu3 }
 0x527   :  { %v2201_v54 = vadd.f32 %v2200_v55, %v1939_v5 }
 0x528   :  { %v2340_v57 = vadd.f32 %v4327_v34, %v2330_v29 }
 0x529   :  { %v2320_v59 = vadd.f32 %v2201_v54, %v2117_v56  ;;  %v2296_v25 = vpop.f32.mrf.mxu2 }
 0x52a   :  { %v2348_v63 = vadd.f32 %v3218_v0, %v2340_v57  ;;  %v2297_v32 = vadd.f32 %v2296_v25, %v2044_v58  ;;  %v2115_v58 = vadd.f32 %v2114_v21, %v4307_v28  ;;  %v2311_v28 = vmul.f32 %v3649_v23, %v2218_v4  ;;  %v3222_v23 = vld [vmem:[%s4380_s0 + $0x20] sm:$0xff] }
 0x52b   :  { %v2279_v14 = vpop.f32.mrf.mxu1 }
 0x52c   :  { %2356 = vst [vmem:[#allocation5] sm:$0xff] %v2348_v63  ;;  %v2331_v31 = vadd.f32 %v2315_v61, %v2297_v32  ;;  %v2280_v5 = vadd.f32 %v2279_v14, %v2027_v1  ;;  %v2318_v52 = vadd.f32 %v2310_v26, %v2115_v58  ;;  %v2319_v40 = vadd.f32 %v2311_v28, %v2134_v3 }
 0x52e   :  { %v2341_v42 = vadd.f32 %v2339_v37, %v2331_v31  ;;  %v2324_v18 = vmul.f32 %v3641_v12, %v2280_v5 }
 0x530   :  { %v2349_v10 = vadd.f32 %v3219_v49, %v2341_v42  ;;  %v2332_v19 = vadd.f32 %v2324_v18, %v2316_v60 }
 0x531   :  { %v2298_v20 = vpop.f32.mrf.mxu2 }
 0x532   :  { %2357 = vst [vmem:[#allocation5 + $0x8] sm:$0xff] %v2349_v10  ;;  %v2342_v53 = vadd.f32 %v4327_v34, %v2332_v19  ;;  %v2299_v1 = vadd.f32 %v2298_v20, %v4309_v62 }
 0x533   :  { %v2282_v24 = vpop.f32.mrf.mxu1 }
 0x534   :  { %v2350_v36 = vadd.f32 %v3220_v33, %v2342_v53  ;;  %v2325_v13 = vmul.f32 %v3641_v12, %v2299_v1  ;;  %v2283_v60 = vadd.f32 %v2282_v24, %v4315_v7  ;;  %v3221_v12 = vld [vmem:[%s4380_s0 + $0x18] sm:$0xff] }
 0x536   :  { %2358 = vst [vmem:[#allocation5 + $0x10] sm:$0xff] %v2350_v36  ;;  %v2333_v21 = vadd.f32 %v2325_v13, %v4321_v22  ;;  %v2334_v38 = vadd.f32 %v2318_v52, %v2283_v60 }
 0x538   :  { %v2343_v62 = vadd.f32 %v2339_v37, %v2333_v21  ;;  %v2344_v17 = vadd.f32 %v4327_v34, %v2334_v38 }
 0x539   :  { %v2301_v8 = vpop.f32.mrf.mxu2 }
 0x53a   :  { %v2351_v43 = vadd.f32 %v3221_v12, %v2343_v62  ;;  %v2352_v7 = vadd.f32 %v3222_v23, %v2344_v17  ;;  %v2302_v16 = vadd.f32 %v2301_v8, %v4311_v2 }
 0x53b   :  { %v2284_v39 = vpop.f32.mrf.mxu1 }
 0x53c   :  { %2359 = vst [vmem:[#allocation5 + $0x18] sm:$0xff] %v2351_v43  ;;  %v2335_v22 = vadd.f32 %v2319_v40, %v2302_v16  ;;  %v2285_v44 = vadd.f32 %v2284_v39, %v4319_v15  ;;  %v3224_v15 = vld [vmem:[%s4380_s0 + $0x30] sm:$0xff] }
 0x53d   :  { %2360 = vst [vmem:[#allocation5 + $0x20] sm:$0xff] %v2352_v7 }
 0x53e   :  { %v2345_v45 = vadd.f32 %v2339_v37, %v2335_v22  ;;  %v2328_v51 = vmul.f32 %v3684_v35, %v2285_v44 }
 0x540   :  { %v2353_v9 = vadd.f32 %v3223_v46, %v2345_v45  ;;  %v2336_v48 = vadd.f32 %v2328_v51, %v2320_v59 }
 0x541   :  { %v2303_v50 = vpop.f32.mrf.mxu2 }
 0x542   :  { %2361 = vst [vmem:[#allocation5 + $0x28] sm:$0xff] %v2353_v9  ;;  %v2346_v27 = vadd.f32 %v4327_v34, %v2336_v48  ;;  %v2304_v2 = vadd.f32 %v2303_v50, %v4317_v41  ;;  %v3225_v41 = vld [vmem:[%s4380_s0 + $0x38] sm:$0xff] }
 0x544   :  { %v2354_v11 = vadd.f32 %v3224_v15, %v2346_v27  ;;  %v2329_v29 = vmul.f32 %v3684_v35, %v2304_v2 }
 0x546   :  { %2362 = vst [vmem:[#allocation5 + $0x30] sm:$0xff] %v2354_v11  ;;  %v2337_v55 = vadd.f32 %v2329_v29, %v4324_v47 }
 0x548   :  { %v2347_v56 = vadd.f32 %v2339_v37, %v2337_v55 }
 0x54a   :  { %v2355_v34 = vadd.f32 %v3225_v41, %v2347_v56 }
 0x54c   :  { %2363 = vst [vmem:[#allocation5 + $0x38] sm:$0xff] %v2355_v34 }
 0x54d   :  { %2376 = dma.vmem_to_hbm [thread:$0]  %s2369_s13, 1024, %s2371_s15, [#allocation4], %s3298_s18, %s3298_s18, %s3299_s19  }
 0x54e   :  { %3276 = dma.done.wait [#allocation4], 1024  }
 0x54f   :  { %3277 = vsyncadd [#allocation4], 4294966272 }
 0x550   :  { %2381 = vsyncpa [#allocation3], 1 }
 0x551   :  { %2382 = vsyncpa [#allocation4], 1 }

</bundles_post_ra>
